<compile_context>
chip_gen: v7x
topology: tpu7x:2x2x1
jax: 0.10.0
libtpu: 0.0.40
codegen_flags: <defaults>
</compile_context>

<pallas_src>
import functools

import jax
import jax.numpy as jnp
from jax import lax
from jax.experimental import pallas as pl
from jax.experimental.pallas import tpu as pltpu


# ----------------------------- in-kernel helpers ----------------------------

def _pool2x2_into(y, stage_ref, pad_ref, guard, bt, hh, ww):
    """2x2 average pooling of y (bt*hh*ww, C), rows ordered (img, h, w).

    Writes the pooled rows into pad_ref[guard : guard + bt*hh*ww//4, :] (the
    zero-halo staging buffer of the next conv).  Only lane-dense full stores,
    stride-2 sublane reads and contiguous row-block adds (VPU work).
    """
    rows = bt * hh * ww
    halfh, halfw = hh // 2, ww // 2
    stage_ref[...] = y                                      # one full-height store
    evens = stage_ref[pl.ds(0, rows // 2, stride=2), :]     # columns 0,2,4,...
    odds = stage_ref[pl.ds(1, rows // 2, stride=2), :]      # columns 1,3,5,...
    s = evens + odds                    # horizontal pair sums, rows (img, h, w//2)
    for blk in range(bt * halfh):       # vertical pairs, stored already compacted
        top = s[(2 * blk) * halfw:(2 * blk + 1) * halfw, :]
        bot = s[(2 * blk + 1) * halfw:(2 * blk + 2) * halfw, :]
        pad_ref[guard + blk * halfw:guard + (blk + 1) * halfw, :] = (top + bot) * 0.25


def _conv3x3_staged(pad_ref, guard, wmat_ref, bias_ref, bt, hh, ww, *, relu):
    """3x3 'same' conv (one bf16 MXU matmul, K = 9*Cin) over the activation staged in
    pad_ref[guard : guard + bt*hh*ww, :].

    The zero halo rows around the staged block provide the top/bottom 'same' padding;
    left/right padding (and, for bt > 1, image boundaries inside the stacked batch) is
    handled with full-height lane masks.  No partial stores, no zero-fill sweeps.
    """
    rows = bt * hh * ww
    r = lax.broadcasted_iota(jnp.int32, (rows, 1), 0)
    w_idx = r % ww
    h_idx = (r // ww) % hh if bt > 1 else None
    taps = []
    for dy in range(3):
        for dx in range(3):
            off = (dy - 1) * ww + (dx - 1)
            tap = pad_ref[guard + off:guard + off + rows, :]   # contiguous window read
            if dx == 0:
                tap = jnp.where(w_idx >= 1, tap, 0.0)
            elif dx == 2:
                tap = jnp.where(w_idx <= ww - 2, tap, 0.0)
            if bt > 1:                 # halo rows only exist at the ends of the stack
                if dy == 0:
                    tap = jnp.where(h_idx >= 1, tap, 0.0)
                elif dy == 2:
                    tap = jnp.where(h_idx <= hh - 2, tap, 0.0)
            taps.append(tap.astype(jnp.bfloat16))
    t = jnp.concatenate(taps, axis=1)                          # (rows, 9*Cin) bf16
    y = (jnp.dot(t, wmat_ref[...], preferred_element_type=jnp.float32)
         + bias_ref[...])
    return jnp.maximum(y, 0.0) if relu else y


def _encoder_kernel(x_ref, w1_ref, b1_ref, w2_ref, b2_ref, w3_ref, b3_ref,
                    o_ref, a1_ref, pad2_ref, a2_ref, pad3_ref, *, h, w, bt, g2, g3):
    ph, pw = h // 2, w // 2
    qh, qw = h // 4, w // 4
    rows2, rows3 = bt * ph * pw, bt * qh * qw

    # conv1 (no ReLU): lane-dense im2col comes from the wrapper -> one bf16 MXU matmul
    y1 = (jnp.dot(x_ref[...], w1_ref[...], preferred_element_type=jnp.float32)
          + b1_ref[...])

    # pool1 (VPU) -> stage conv2 input behind zero halo rows
    pad2_ref[0:g2, :] = jnp.zeros((g2, pad2_ref.shape[1]), pad2_ref.dtype)
    pad2_ref[g2 + rows2:g2 + rows2 + g2, :] = jnp.zeros((g2, pad2_ref.shape[1]),
                                                        pad2_ref.dtype)
    _pool2x2_into(y1, a1_ref, pad2_ref, g2, bt, h, w)

    # conv2 + ReLU
    y2 = _conv3x3_staged(pad2_ref, g2, w2_ref, b2_ref, bt, ph, pw, relu=True)

    # pool2 (VPU) -> stage conv3 input behind zero halo rows
    pad3_ref[0:g3, :] = jnp.zeros((g3, pad3_ref.shape[1]), pad3_ref.dtype)
    pad3_ref[g3 + rows3:g3 + rows3 + g3, :] = jnp.zeros((g3, pad3_ref.shape[1]),
                                                        pad3_ref.dtype)
    _pool2x2_into(y2, a2_ref, pad3_ref, g3, bt, ph, pw)

    # conv3 + ReLU -> output
    y3 = _conv3x3_staged(pad3_ref, g3, w3_ref, b3_ref, bt, qh, qw, relu=True)
    o_ref[...] = y3.astype(o_ref.dtype)


# ------------------------------ host-side prep ------------------------------

def _prep_weight(w_oihw, k_total=None):
    """(Cout, Cin, 3, 3) -> (K, Cout) bf16 with K ordered (dy, dx, ci), padded to k_total."""
    cout, cin = w_oihw.shape[0], w_oihw.shape[1]
    wm = jnp.transpose(w_oihw, (2, 3, 1, 0)).reshape(9 * cin, cout)
    if k_total is not None and k_total > 9 * cin:
        wm = jnp.pad(wm, ((0, k_total - 9 * cin), (0, 0)))
    return wm.astype(jnp.bfloat16)


def _conv1_im2col(x_nhwc, k_total):
    """3x3 'same' im2col of the raw input, built in XLA (lane-dense kernel input).

    Returns (n*h*w, k_total) bf16 with K ordered (dy, dx, ci), zero-padded from 9*cin
    to k_total (matching the row padding of the conv1 weight matrix)."""
    n, h, w, c = x_nhwc.shape
    xp = jnp.pad(x_nhwc, ((0, 0), (1, 1), (1, 1), (0, 0)))
    taps = [xp[:, dy:dy + h, dx:dx + w, :] for dy in range(3) for dx in range(3)]
    col = jnp.concatenate(taps, axis=-1)                        # (n, h, w, 9c)
    if k_total > 9 * c:
        col = jnp.pad(col, ((0, 0), (0, 0), (0, 0), (0, k_total - 9 * c)))
    return col.reshape(n * h * w, k_total).astype(jnp.bfloat16)


def _pick_b_tile(n, max_tile=8):
    """Images stacked per grid step.  Larger tiles raise the MXU M dimension; keep at
    least 2 grid steps so both v7x TensorCores get work."""
    best = 1
    for cand in range(1, min(n, max_tile) + 1):
        if n % cand == 0 and n // cand >= min(2, n):
            best = cand
    return best


@jax.jit
def encoder_forward(x_nchw, params):
    n, cin, h, w = x_nchw.shape
    assert h % 4 == 0 and w % 4 == 0
    hw = h * w
    k1 = ((9 * cin + 63) // 64) * 64                             # 54 -> 64

    x_col = _conv1_im2col(jnp.transpose(x_nchw, (0, 2, 3, 1)), k1)   # (n*hw, k1) bf16

    w1 = _prep_weight(params["w1"], k1); b1 = params["b1"].reshape(1, -1)
    w2 = _prep_weight(params["w2"]);     b2 = params["b2"].reshape(1, -1)
    w3 = _prep_weight(params["w3"]);     b3 = params["b3"].reshape(1, -1)
    c1, c2, c3 = w1.shape[1], w2.shape[1], w3.shape[1]           # 64, 128, 256

    bt = _pick_b_tile(n)
    rows_in, rows_out = bt * hw, bt * hw // 16
    g2 = ((w // 2 + 1 + 7) // 8) * 8          # halo rows (sublane-aligned) for conv2
    g3 = ((w // 4 + 1 + 7) // 8) * 8          # halo rows for conv3

    def const(a):
        return pl.BlockSpec(a.shape, lambda i: (0, 0))

    # Explicit VMEM budget: weights/biases + double-buffered I/O blocks + scratches,
    # with headroom for in-kernel im2col / activation temporaries.
    resident = (2 * (w1.size + w2.size + w3.size)
                + 4 * (b1.size + b2.size + b3.size)
                + 2 * 2 * rows_in * k1 + 2 * 4 * rows_out * c3
                + 4 * (rows_in * c1 + (rows_in // 4 + 2 * g2) * c1
                       + (rows_in // 4) * c2 + (rows_in // 16 + 2 * g3) * c2))
    vmem_limit = int(min(64 << 20, max(8 << 20, 8 * resident)))

    out_flat = pl.pallas_call(
        functools.partial(_encoder_kernel, h=h, w=w, bt=bt, g2=g2, g3=g3),
        out_shape=jax.ShapeDtypeStruct((n * hw // 16, c3), x_nchw.dtype),
        grid=(n // bt,),
        in_specs=[pl.BlockSpec((rows_in, k1), lambda i: (i, 0)),
                  const(w1), const(b1), const(w2), const(b2), const(w3), const(b3)],
        out_specs=pl.BlockSpec((rows_out, c3), lambda i: (i, 0)),
        scratch_shapes=[
            pltpu.VMEM((rows_in, c1), jnp.float32),                 # y1 staging (pool1)
            pltpu.VMEM((rows_in // 4 + 2 * g2, c1), jnp.float32),   # conv2 input + halo
            pltpu.VMEM((rows_in // 4, c2), jnp.float32),            # y2 staging (pool2)
            pltpu.VMEM((rows_in // 16 + 2 * g3, c2), jnp.float32),  # conv3 input + halo
        ],
        compiler_params=pltpu.CompilerParams(
            dimension_semantics=("parallel",),
            vmem_limit_bytes=vmem_limit),
    )(x_col, w1, b1, w2, b2, w3, b3)

    out = out_flat.reshape(n, h // 4, w // 4, c3)
    return jnp.transpose(out, (0, 3, 1, 2))                      # NHWC -> NCHW


# ------------------------------- init / reference ---------------------------

def init_params(key):
    """Deterministic init matching PyTorch Conv2d shapes (Cout, Cin, 3, 3)."""
    ks = jax.random.split(key, 6)

    def conv_init(kw, kb, cout, cin):
        bound = 1.0 / jnp.sqrt(jnp.float32(cin * 9))
        wgt = jax.random.uniform(kw, (cout, cin, 3, 3), jnp.float32, -bound, bound)
        bias = jax.random.uniform(kb, (cout,), jnp.float32, -bound, bound)
        return wgt, bias

    w1, b1 = conv_init(ks[0], ks[1], 64, 6)
    w2, b2 = conv_init(ks[2], ks[3], 128, 64)
    w3, b3 = conv_init(ks[4], ks[5], 256, 128)
    return dict(w1=w1, b1=b1, w2=w2, b2=b2, w3=w3, b3=b3)


def encoder_reference(x_nchw, params):
    def conv(x, w, b):
        y = lax.conv_general_dilated(
            x, w, (1, 1), [(1, 1), (1, 1)],
            dimension_numbers=("NCHW", "OIHW", "NCHW"),
        )
        return y + b[None, :, None, None]

    def pool(x):
        n, c, h, w = x.shape
        return x.reshape(n, c, h // 2, 2, w // 2, 2).mean(axis=(3, 5))

    x = pool(conv(x_nchw, params["w1"], params["b1"]))
    x = pool(jax.nn.relu(conv(x, params["w2"], params["b2"])))
    x = jax.nn.relu(conv(x, params["w3"], params["b3"]))
    return x


# --------------------------------- main --------------------------------------

if __name__ == "__main__":
    key = jax.random.PRNGKey(0)
    kx, kp = jax.random.split(key)
    x = jax.random.normal(kx, (2, 6, 16, 16), jnp.float32)  # NCHW, like PyTorch
    params = init_params(kp)

    out = jax.block_until_ready(encoder_forward(x, params))
    assert out.shape == (2, 256, 4, 4), out.shape

    ref = jax.block_until_ready(encoder_reference(x, params))
    max_err = float(jnp.max(jnp.abs(out - ref)))
    # bf16 MXU inputs (f32 accumulation): tolerance relaxed vs. the pure-f32 version.
    assert jnp.allclose(out, ref, atol=3e-2, rtol=3e-2), max_err

    print("KERNEL_OK")
</pallas_src>

<mosaic_0001>
module attributes {stable_mosaic.version = 11 : i64} {
  func.func @_encoder_kernel(%arg0: i32, %arg1: memref<256x64xbf16, #tpu.memory_space<vmem>>, %arg2: memref<64x64xbf16, #tpu.memory_space<vmem>>, %arg3: memref<1x64xf32, #tpu.memory_space<vmem>>, %arg4: memref<576x128xbf16, #tpu.memory_space<vmem>>, %arg5: memref<1x128xf32, #tpu.memory_space<vmem>>, %arg6: memref<1152x256xbf16, #tpu.memory_space<vmem>>, %arg7: memref<1x256xf32, #tpu.memory_space<vmem>>, %arg8: memref<16x256xf32, #tpu.memory_space<vmem>>, %arg9: memref<256x64xf32, #tpu.memory_space<vmem>>, %arg10: memref<96x64xf32, #tpu.memory_space<vmem>>, %arg11: memref<64x128xf32, #tpu.memory_space<vmem>>, %arg12: memref<32x128xf32, #tpu.memory_space<vmem>>) attributes {dimension_semantics = [#tpu.dimension_semantics<parallel>], iteration_bounds = array<i64: 2>, scalar_prefetch = 0 : i64, scratch_operands = 4 : i64, tpu.core_type = #tpu.core_type<tc>, window_params = [{transform_indices = @transform_0, window_bounds = array<i64: 256, 64>}, {pipeline_mode = #tpu.pipeline_mode<synchronous>, transform_indices = @transform_1, window_bounds = array<i64: 64, 64>}, {pipeline_mode = #tpu.pipeline_mode<synchronous>, transform_indices = @transform_2, window_bounds = array<i64: 1, 64>}, {pipeline_mode = #tpu.pipeline_mode<synchronous>, transform_indices = @transform_3, window_bounds = array<i64: 576, 128>}, {pipeline_mode = #tpu.pipeline_mode<synchronous>, transform_indices = @transform_4, window_bounds = array<i64: 1, 128>}, {pipeline_mode = #tpu.pipeline_mode<synchronous>, transform_indices = @transform_5, window_bounds = array<i64: 1152, 256>}, {pipeline_mode = #tpu.pipeline_mode<synchronous>, transform_indices = @transform_6, window_bounds = array<i64: 1, 256>}, {transform_indices = @transform_7, window_bounds = array<i64: 16, 256>}]} {
    %c0 = arith.constant 0 : index
    %c0_0 = arith.constant 0 : index
    %0 = vector.load %arg1[%c0, %c0_0] : memref<256x64xbf16, #tpu.memory_space<vmem>>, vector<256x64xbf16>
    %c0_1 = arith.constant 0 : index
    %c0_2 = arith.constant 0 : index
    %1 = vector.load %arg2[%c0_1, %c0_2] : memref<64x64xbf16, #tpu.memory_space<vmem>>, vector<64x64xbf16>
    %cst = arith.constant dense<0.000000e+00> : vector<256x64xf32>
    %2 = tpu.matmul %0, %1, %cst {dimension_numbers = #tpu.dot_dimension_numbers<[1], [0], [0], [1], [0, 0, 1, 1], [], []>} : vector<256x64xbf16>, vector<64x64xbf16>, vector<256x64xf32> -> vector<256x64xf32>
    %c0_3 = arith.constant 0 : index
    %c0_4 = arith.constant 0 : index
    %3 = vector.load %arg3[%c0_3, %c0_4] : memref<1x64xf32, #tpu.memory_space<vmem>>, vector<1x64xf32>
    %4 = vector.broadcast %3 : vector<1x64xf32> to vector<256x64xf32>
    %5 = arith.addf %2, %4 : vector<256x64xf32>
    %cst_5 = arith.constant 0.000000e+00 : f32
    %6 = vector.broadcast %cst_5 : f32 to vector<16x64xf32>
    %c0_6 = arith.constant 0 : index
    %c0_7 = arith.constant 0 : index
    %7 = vector.load %arg10[%c0_6, %c0_7] : memref<96x64xf32, #tpu.memory_space<vmem>>, vector<16x64xf32>
    tpu.vector_store %arg10[%c0_6, %c0_7], %6 {strides = array<i32>} : memref<96x64xf32, #tpu.memory_space<vmem>>, vector<16x64xf32>,
    %cst_8 = arith.constant 0.000000e+00 : f32
    %8 = vector.broadcast %cst_8 : f32 to vector<16x64xf32>
    %c80 = arith.constant 80 : index
    %c0_9 = arith.constant 0 : index
    %9 = vector.load %arg10[%c80, %c0_9] : memref<96x64xf32, #tpu.memory_space<vmem>>, vector<16x64xf32>
    tpu.vector_store %arg10[%c80, %c0_9], %8 {strides = array<i32>} : memref<96x64xf32, #tpu.memory_space<vmem>>, vector<16x64xf32>,
    %c0_10 = arith.constant 0 : index
    %c0_11 = arith.constant 0 : index
    %10 = vector.load %arg9[%c0_10, %c0_11] : memref<256x64xf32, #tpu.memory_space<vmem>>, vector<256x64xf32>
    tpu.vector_store %arg9[%c0_10, %c0_11], %5 {strides = array<i32>} : memref<256x64xf32, #tpu.memory_space<vmem>>, vector<256x64xf32>,
    %c0_12 = arith.constant 0 : index
    %c0_13 = arith.constant 0 : index
    %11 = tpu.strided_load %arg9[%c0_12, %c0_13] {strides = array<i32: 2, 1>} : memref<256x64xf32, #tpu.memory_space<vmem>>, vector<128x64xf32>
    %c1 = arith.constant 1 : index
    %c0_14 = arith.constant 0 : index
    %12 = tpu.strided_load %arg9[%c1, %c0_14] {strides = array<i32: 2, 1>} : memref<256x64xf32, #tpu.memory_space<vmem>>, vector<128x64xf32>
    %13 = arith.addf %11, %12 : vector<128x64xf32>
    %14 = vector.extract_strided_slice %13 {offsets = [0, 0], sizes = [8, 64], strides = [1, 1]} : vector<128x64xf32> to vector<8x64xf32>
    %15 = vector.extract_strided_slice %13 {offsets = [8, 0], sizes = [8, 64], strides = [1, 1]} : vector<128x64xf32> to vector<8x64xf32>
    %16 = arith.addf %14, %15 : vector<8x64xf32>
    %cst_15 = arith.constant 2.500000e-01 : f32
    %17 = vector.broadcast %cst_15 : f32 to vector<8x64xf32>
    %18 = arith.mulf %16, %17 : vector<8x64xf32>
    %c16 = arith.constant 16 : index
    %c0_16 = arith.constant 0 : index
    %19 = vector.load %arg10[%c16, %c0_16] : memref<96x64xf32, #tpu.memory_space<vmem>>, vector<8x64xf32>
    tpu.vector_store %arg10[%c16, %c0_16], %18 {strides = array<i32>} : memref<96x64xf32, #tpu.memory_space<vmem>>, vector<8x64xf32>,
    %20 = vector.extract_strided_slice %13 {offsets = [16, 0], sizes = [8, 64], strides = [1, 1]} : vector<128x64xf32> to vector<8x64xf32>
    %21 = vector.extract_strided_slice %13 {offsets = [24, 0], sizes = [8, 64], strides = [1, 1]} : vector<128x64xf32> to vector<8x64xf32>
    %22 = arith.addf %20, %21 : vector<8x64xf32>
    %cst_17 = arith.constant 2.500000e-01 : f32
    %23 = vector.broadcast %cst_17 : f32 to vector<8x64xf32>
    %24 = arith.mulf %22, %23 : vector<8x64xf32>
    %c24 = arith.constant 24 : index
    %c0_18 = arith.constant 0 : index
    %25 = vector.load %arg10[%c24, %c0_18] : memref<96x64xf32, #tpu.memory_space<vmem>>, vector<8x64xf32>
    tpu.vector_store %arg10[%c24, %c0_18], %24 {strides = array<i32>} : memref<96x64xf32, #tpu.memory_space<vmem>>, vector<8x64xf32>,
    %26 = vector.extract_strided_slice %13 {offsets = [32, 0], sizes = [8, 64], strides = [1, 1]} : vector<128x64xf32> to vector<8x64xf32>
    %27 = vector.extract_strided_slice %13 {offsets = [40, 0], sizes = [8, 64], strides = [1, 1]} : vector<128x64xf32> to vector<8x64xf32>
    %28 = arith.addf %26, %27 : vector<8x64xf32>
    %cst_19 = arith.constant 2.500000e-01 : f32
    %29 = vector.broadcast %cst_19 : f32 to vector<8x64xf32>
    %30 = arith.mulf %28, %29 : vector<8x64xf32>
    %c32 = arith.constant 32 : index
    %c0_20 = arith.constant 0 : index
    %31 = vector.load %arg10[%c32, %c0_20] : memref<96x64xf32, #tpu.memory_space<vmem>>, vector<8x64xf32>
    tpu.vector_store %arg10[%c32, %c0_20], %30 {strides = array<i32>} : memref<96x64xf32, #tpu.memory_space<vmem>>, vector<8x64xf32>,
    %32 = vector.extract_strided_slice %13 {offsets = [48, 0], sizes = [8, 64], strides = [1, 1]} : vector<128x64xf32> to vector<8x64xf32>
    %33 = vector.extract_strided_slice %13 {offsets = [56, 0], sizes = [8, 64], strides = [1, 1]} : vector<128x64xf32> to vector<8x64xf32>
    %34 = arith.addf %32, %33 : vector<8x64xf32>
    %cst_21 = arith.constant 2.500000e-01 : f32
    %35 = vector.broadcast %cst_21 : f32 to vector<8x64xf32>
    %36 = arith.mulf %34, %35 : vector<8x64xf32>
    %c40 = arith.constant 40 : index
    %c0_22 = arith.constant 0 : index
    %37 = vector.load %arg10[%c40, %c0_22] : memref<96x64xf32, #tpu.memory_space<vmem>>, vector<8x64xf32>
    tpu.vector_store %arg10[%c40, %c0_22], %36 {strides = array<i32>} : memref<96x64xf32, #tpu.memory_space<vmem>>, vector<8x64xf32>,
    %38 = vector.extract_strided_slice %13 {offsets = [64, 0], sizes = [8, 64], strides = [1, 1]} : vector<128x64xf32> to vector<8x64xf32>
    %39 = vector.extract_strided_slice %13 {offsets = [72, 0], sizes = [8, 64], strides = [1, 1]} : vector<128x64xf32> to vector<8x64xf32>
    %40 = arith.addf %38, %39 : vector<8x64xf32>
    %cst_23 = arith.constant 2.500000e-01 : f32
    %41 = vector.broadcast %cst_23 : f32 to vector<8x64xf32>
    %42 = arith.mulf %40, %41 : vector<8x64xf32>
    %c48 = arith.constant 48 : index
    %c0_24 = arith.constant 0 : index
    %43 = vector.load %arg10[%c48, %c0_24] : memref<96x64xf32, #tpu.memory_space<vmem>>, vector<8x64xf32>
    tpu.vector_store %arg10[%c48, %c0_24], %42 {strides = array<i32>} : memref<96x64xf32, #tpu.memory_space<vmem>>, vector<8x64xf32>,
    %44 = vector.extract_strided_slice %13 {offsets = [80, 0], sizes = [8, 64], strides = [1, 1]} : vector<128x64xf32> to vector<8x64xf32>
    %45 = vector.extract_strided_slice %13 {offsets = [88, 0], sizes = [8, 64], strides = [1, 1]} : vector<128x64xf32> to vector<8x64xf32>
    %46 = arith.addf %44, %45 : vector<8x64xf32>
    %cst_25 = arith.constant 2.500000e-01 : f32
    %47 = vector.broadcast %cst_25 : f32 to vector<8x64xf32>
    %48 = arith.mulf %46, %47 : vector<8x64xf32>
    %c56 = arith.constant 56 : index
    %c0_26 = arith.constant 0 : index
    %49 = vector.load %arg10[%c56, %c0_26] : memref<96x64xf32, #tpu.memory_space<vmem>>, vector<8x64xf32>
    tpu.vector_store %arg10[%c56, %c0_26], %48 {strides = array<i32>} : memref<96x64xf32, #tpu.memory_space<vmem>>, vector<8x64xf32>,
    %50 = vector.extract_strided_slice %13 {offsets = [96, 0], sizes = [8, 64], strides = [1, 1]} : vector<128x64xf32> to vector<8x64xf32>
    %51 = vector.extract_strided_slice %13 {offsets = [104, 0], sizes = [8, 64], strides = [1, 1]} : vector<128x64xf32> to vector<8x64xf32>
    %52 = arith.addf %50, %51 : vector<8x64xf32>
    %cst_27 = arith.constant 2.500000e-01 : f32
    %53 = vector.broadcast %cst_27 : f32 to vector<8x64xf32>
    %54 = arith.mulf %52, %53 : vector<8x64xf32>
    %c64 = arith.constant 64 : index
    %c0_28 = arith.constant 0 : index
    %55 = vector.load %arg10[%c64, %c0_28] : memref<96x64xf32, #tpu.memory_space<vmem>>, vector<8x64xf32>
    tpu.vector_store %arg10[%c64, %c0_28], %54 {strides = array<i32>} : memref<96x64xf32, #tpu.memory_space<vmem>>, vector<8x64xf32>,
    %56 = vector.extract_strided_slice %13 {offsets = [112, 0], sizes = [8, 64], strides = [1, 1]} : vector<128x64xf32> to vector<8x64xf32>
    %57 = vector.extract_strided_slice %13 {offsets = [120, 0], sizes = [8, 64], strides = [1, 1]} : vector<128x64xf32> to vector<8x64xf32>
    %58 = arith.addf %56, %57 : vector<8x64xf32>
    %cst_29 = arith.constant 2.500000e-01 : f32
    %59 = vector.broadcast %cst_29 : f32 to vector<8x64xf32>
    %60 = arith.mulf %58, %59 : vector<8x64xf32>
    %c72 = arith.constant 72 : index
    %c0_30 = arith.constant 0 : index
    %61 = vector.load %arg10[%c72, %c0_30] : memref<96x64xf32, #tpu.memory_space<vmem>>, vector<8x64xf32>
    tpu.vector_store %arg10[%c72, %c0_30], %60 {strides = array<i32>} : memref<96x64xf32, #tpu.memory_space<vmem>>, vector<8x64xf32>,
    %62 = tpu.iota {dimensions = array<i32: 0>} : vector<64x1xi32>
    %c8_i32 = arith.constant 8 : i32
    %c0_i32 = arith.constant 0 : i32
    %63 = arith.cmpi eq, %c8_i32, %c0_i32 : i32
    %c1_i32 = arith.constant 1 : i32
    %64 = arith.select %63, %c1_i32, %c8_i32 : i32
    %65 = vector.broadcast %64 : i32 to vector<64x1xi32>
    %66 = arith.remsi %62, %65 : vector<64x1xi32>
    %c0_i32_31 = arith.constant 0 : i32
    %67 = vector.broadcast %c0_i32_31 : i32 to vector<64x1xi32>
    %68 = arith.cmpi ne, %66, %67 : vector<64x1xi32>
    %c0_i32_32 = arith.constant 0 : i32
    %69 = vector.broadcast %c0_i32_32 : i32 to vector<64x1xi32>
    %70 = arith.cmpi slt, %66, %69 : vector<64x1xi32>
    %c0_i32_33 = arith.constant 0 : i32
    %71 = arith.cmpi slt, %64, %c0_i32_33 : i32
    %72 = vector.broadcast %71 : i1 to vector<64x1xi1>
    %73 = vector.broadcast %72 : vector<64x1xi1> to vector<64x1xi1>
    %74 = arith.xori %70, %73 : vector<64x1xi1>
    %75 = arith.andi %74, %68 : vector<64x1xi1>
    %76 = vector.broadcast %64 : i32 to vector<64x1xi32>
    %77 = arith.addi %66, %76 : vector<64x1xi32>
    %78 = arith.select %75, %77, %66 : vector<64x1xi1>, vector<64x1xi32>
    %c7 = arith.constant 7 : index
    %c0_34 = arith.constant 0 : index
    %79 = vector.load %arg10[%c7, %c0_34] : memref<96x64xf32, #tpu.memory_space<vmem>>, vector<64x64xf32>
    %c1_i32_35 = arith.constant 1 : i32
    %80 = vector.broadcast %c1_i32_35 : i32 to vector<64x1xi32>
    %81 = arith.cmpi sge, %78, %80 : vector<64x1xi32>
    %cst_36 = arith.constant 0.000000e+00 : f32
    %82 = vector.shape_cast %81 : vector<64x1xi1> to vector<64x1xi1>
    %83 = vector.broadcast %82 : vector<64x1xi1> to vector<64x64xi1>
    %84 = vector.broadcast %cst_36 : f32 to vector<64x64xf32>
    %85 = arith.select %83, %79, %84 : vector<64x64xi1>, vector<64x64xf32>
    %86 = arith.truncf %85 : vector<64x64xf32> to vector<64x64xbf16>
    %c8 = arith.constant 8 : index
    %c0_37 = arith.constant 0 : index
    %87 = vector.load %arg10[%c8, %c0_37] : memref<96x64xf32, #tpu.memory_space<vmem>>, vector<64x64xf32>
    %88 = arith.truncf %87 : vector<64x64xf32> to vector<64x64xbf16>
    %c9 = arith.constant 9 : index
    %c0_38 = arith.constant 0 : index
    %89 = vector.load %arg10[%c9, %c0_38] : memref<96x64xf32, #tpu.memory_space<vmem>>, vector<64x64xf32>
    %c6_i32 = arith.constant 6 : i32
    %90 = vector.broadcast %c6_i32 : i32 to vector<64x1xi32>
    %91 = arith.cmpi sle, %78, %90 : vector<64x1xi32>
    %cst_39 = arith.constant 0.000000e+00 : f32
    %92 = vector.shape_cast %91 : vector<64x1xi1> to vector<64x1xi1>
    %93 = vector.broadcast %92 : vector<64x1xi1> to vector<64x64xi1>
    %94 = vector.broadcast %cst_39 : f32 to vector<64x64xf32>
    %95 = arith.select %93, %89, %94 : vector<64x64xi1>, vector<64x64xf32>
    %96 = arith.truncf %95 : vector<64x64xf32> to vector<64x64xbf16>
    %c15 = arith.constant 15 : index
    %c0_40 = arith.constant 0 : index
    %97 = vector.load %arg10[%c15, %c0_40] : memref<96x64xf32, #tpu.memory_space<vmem>>, vector<64x64xf32>
    %c1_i32_41 = arith.constant 1 : i32
    %98 = vector.broadcast %c1_i32_41 : i32 to vector<64x1xi32>
    %99 = arith.cmpi sge, %78, %98 : vector<64x1xi32>
    %cst_42 = arith.constant 0.000000e+00 : f32
    %100 = vector.shape_cast %99 : vector<64x1xi1> to vector<64x1xi1>
    %101 = vector.broadcast %100 : vector<64x1xi1> to vector<64x64xi1>
    %102 = vector.broadcast %cst_42 : f32 to vector<64x64xf32>
    %103 = arith.select %101, %97, %102 : vector<64x64xi1>, vector<64x64xf32>
    %104 = arith.truncf %103 : vector<64x64xf32> to vector<64x64xbf16>
    %c16_43 = arith.constant 16 : index
    %c0_44 = arith.constant 0 : index
    %105 = vector.load %arg10[%c16_43, %c0_44] : memref<96x64xf32, #tpu.memory_space<vmem>>, vector<64x64xf32>
    %106 = arith.truncf %105 : vector<64x64xf32> to vector<64x64xbf16>
    %c17 = arith.constant 17 : index
    %c0_45 = arith.constant 0 : index
    %107 = vector.load %arg10[%c17, %c0_45] : memref<96x64xf32, #tpu.memory_space<vmem>>, vector<64x64xf32>
    %c6_i32_46 = arith.constant 6 : i32
    %108 = vector.broadcast %c6_i32_46 : i32 to vector<64x1xi32>
    %109 = arith.cmpi sle, %78, %108 : vector<64x1xi32>
    %cst_47 = arith.constant 0.000000e+00 : f32
    %110 = vector.shape_cast %109 : vector<64x1xi1> to vector<64x1xi1>
    %111 = vector.broadcast %110 : vector<64x1xi1> to vector<64x64xi1>
    %112 = vector.broadcast %cst_47 : f32 to vector<64x64xf32>
    %113 = arith.select %111, %107, %112 : vector<64x64xi1>, vector<64x64xf32>
    %114 = arith.truncf %113 : vector<64x64xf32> to vector<64x64xbf16>
    %c23 = arith.constant 23 : index
    %c0_48 = arith.constant 0 : index
    %115 = vector.load %arg10[%c23, %c0_48] : memref<96x64xf32, #tpu.memory_space<vmem>>, vector<64x64xf32>
    %c1_i32_49 = arith.constant 1 : i32
    %116 = vector.broadcast %c1_i32_49 : i32 to vector<64x1xi32>
    %117 = arith.cmpi sge, %78, %116 : vector<64x1xi32>
    %cst_50 = arith.constant 0.000000e+00 : f32
    %118 = vector.shape_cast %117 : vector<64x1xi1> to vector<64x1xi1>
    %119 = vector.broadcast %118 : vector<64x1xi1> to vector<64x64xi1>
    %120 = vector.broadcast %cst_50 : f32 to vector<64x64xf32>
    %121 = arith.select %119, %115, %120 : vector<64x64xi1>, vector<64x64xf32>
    %122 = arith.truncf %121 : vector<64x64xf32> to vector<64x64xbf16>
    %c24_51 = arith.constant 24 : index
    %c0_52 = arith.constant 0 : index
    %123 = vector.load %arg10[%c24_51, %c0_52] : memref<96x64xf32, #tpu.memory_space<vmem>>, vector<64x64xf32>
    %124 = arith.truncf %123 : vector<64x64xf32> to vector<64x64xbf16>
    %c25 = arith.constant 25 : index
    %c0_53 = arith.constant 0 : index
    %125 = vector.load %arg10[%c25, %c0_53] : memref<96x64xf32, #tpu.memory_space<vmem>>, vector<64x64xf32>
    %c6_i32_54 = arith.constant 6 : i32
    %126 = vector.broadcast %c6_i32_54 : i32 to vector<64x1xi32>
    %127 = arith.cmpi sle, %78, %126 : vector<64x1xi32>
    %cst_55 = arith.constant 0.000000e+00 : f32
    %128 = vector.shape_cast %127 : vector<64x1xi1> to vector<64x1xi1>
    %129 = vector.broadcast %128 : vector<64x1xi1> to vector<64x64xi1>
    %130 = vector.broadcast %cst_55 : f32 to vector<64x64xf32>
    %131 = arith.select %129, %125, %130 : vector<64x64xi1>, vector<64x64xf32>
    %132 = arith.truncf %131 : vector<64x64xf32> to vector<64x64xbf16>
    %133 = tpu.concatenate %86, %88, %96, %104, %106, %114, %122, %124, %132 in 1 : vector<64x64xbf16>, vector<64x64xbf16>, vector<64x64xbf16>, vector<64x64xbf16>, vector<64x64xbf16>, vector<64x64xbf16>, vector<64x64xbf16>, vector<64x64xbf16>, vector<64x64xbf16> -> vector<64x576xbf16>
    %c0_56 = arith.constant 0 : index
    %c0_57 = arith.constant 0 : index
    %134 = vector.load %arg4[%c0_56, %c0_57] : memref<576x128xbf16, #tpu.memory_space<vmem>>, vector<576x128xbf16>
    %cst_58 = arith.constant dense<0.000000e+00> : vector<64x128xf32>
    %135 = tpu.matmul %133, %134, %cst_58 {dimension_numbers = #tpu.dot_dimension_numbers<[1], [0], [0], [1], [0, 0, 1, 1], [], []>} : vector<64x576xbf16>, vector<576x128xbf16>, vector<64x128xf32> -> vector<64x128xf32>
    %c0_59 = arith.constant 0 : index
    %c0_60 = arith.constant 0 : index
    %136 = vector.load %arg5[%c0_59, %c0_60] : memref<1x128xf32, #tpu.memory_space<vmem>>, vector<1x128xf32>
    %137 = vector.broadcast %136 : vector<1x128xf32> to vector<64x128xf32>
    %138 = arith.addf %135, %137 : vector<64x128xf32>
    %cst_61 = arith.constant 0.000000e+00 : f32
    %139 = vector.broadcast %cst_61 : f32 to vector<64x128xf32>
    %140 = arith.maximumf %138, %139 : vector<64x128xf32>
    %cst_62 = arith.constant 0.000000e+00 : f32
    %141 = vector.broadcast %cst_62 : f32 to vector<8x128xf32>
    %c0_63 = arith.constant 0 : index
    %c0_64 = arith.constant 0 : index
    %142 = vector.load %arg12[%c0_63, %c0_64] : memref<32x128xf32, #tpu.memory_space<vmem>>, vector<8x128xf32>
    tpu.vector_store %arg12[%c0_63, %c0_64], %141 {strides = array<i32>} : memref<32x128xf32, #tpu.memory_space<vmem>>, vector<8x128xf32>,
    %cst_65 = arith.constant 0.000000e+00 : f32
    %143 = vector.broadcast %cst_65 : f32 to vector<8x128xf32>
    %c24_66 = arith.constant 24 : index
    %c0_67 = arith.constant 0 : index
    %144 = vector.load %arg12[%c24_66, %c0_67] : memref<32x128xf32, #tpu.memory_space<vmem>>, vector<8x128xf32>
    tpu.vector_store %arg12[%c24_66, %c0_67], %143 {strides = array<i32>} : memref<32x128xf32, #tpu.memory_space<vmem>>, vector<8x128xf32>,
    %c0_68 = arith.constant 0 : index
    %c0_69 = arith.constant 0 : index
    %145 = vector.load %arg11[%c0_68, %c0_69] : memref<64x128xf32, #tpu.memory_space<vmem>>, vector<64x128xf32>
    tpu.vector_store %arg11[%c0_68, %c0_69], %140 {strides = array<i32>} : memref<64x128xf32, #tpu.memory_space<vmem>>, vector<64x128xf32>,
    %c0_70 = arith.constant 0 : index
    %c0_71 = arith.constant 0 : index
    %146 = tpu.strided_load %arg11[%c0_70, %c0_71] {strides = array<i32: 2, 1>} : memref<64x128xf32, #tpu.memory_space<vmem>>, vector<32x128xf32>
    %c1_72 = arith.constant 1 : index
    %c0_73 = arith.constant 0 : index
    %147 = tpu.strided_load %arg11[%c1_72, %c0_73] {strides = array<i32: 2, 1>} : memref<64x128xf32, #tpu.memory_space<vmem>>, vector<32x128xf32>
    %148 = arith.addf %146, %147 : vector<32x128xf32>
    %149 = vector.extract_strided_slice %148 {offsets = [0, 0], sizes = [4, 128], strides = [1, 1]} : vector<32x128xf32> to vector<4x128xf32>
    %150 = vector.extract_strided_slice %148 {offsets = [4, 0], sizes = [4, 128], strides = [1, 1]} : vector<32x128xf32> to vector<4x128xf32>
    %151 = arith.addf %149, %150 : vector<4x128xf32>
    %cst_74 = arith.constant 2.500000e-01 : f32
    %152 = vector.broadcast %cst_74 : f32 to vector<4x128xf32>
    %153 = arith.mulf %151, %152 : vector<4x128xf32>
    %c8_75 = arith.constant 8 : index
    %c0_76 = arith.constant 0 : index
    %154 = vector.load %arg12[%c8_75, %c0_76] : memref<32x128xf32, #tpu.memory_space<vmem>>, vector<4x128xf32>
    tpu.vector_store %arg12[%c8_75, %c0_76], %153 {strides = array<i32>} : memref<32x128xf32, #tpu.memory_space<vmem>>, vector<4x128xf32>,
    %155 = vector.extract_strided_slice %148 {offsets = [8, 0], sizes = [4, 128], strides = [1, 1]} : vector<32x128xf32> to vector<4x128xf32>
    %156 = vector.extract_strided_slice %148 {offsets = [12, 0], sizes = [4, 128], strides = [1, 1]} : vector<32x128xf32> to vector<4x128xf32>
    %157 = arith.addf %155, %156 : vector<4x128xf32>
    %cst_77 = arith.constant 2.500000e-01 : f32
    %158 = vector.broadcast %cst_77 : f32 to vector<4x128xf32>
    %159 = arith.mulf %157, %158 : vector<4x128xf32>
    %c12 = arith.constant 12 : index
    %c0_78 = arith.constant 0 : index
    %160 = vector.load %arg12[%c12, %c0_78] : memref<32x128xf32, #tpu.memory_space<vmem>>, vector<4x128xf32>
    tpu.vector_store %arg12[%c12, %c0_78], %159 {strides = array<i32>} : memref<32x128xf32, #tpu.memory_space<vmem>>, vector<4x128xf32>,
    %161 = vector.extract_strided_slice %148 {offsets = [16, 0], sizes = [4, 128], strides = [1, 1]} : vector<32x128xf32> to vector<4x128xf32>
    %162 = vector.extract_strided_slice %148 {offsets = [20, 0], sizes = [4, 128], strides = [1, 1]} : vector<32x128xf32> to vector<4x128xf32>
    %163 = arith.addf %161, %162 : vector<4x128xf32>
    %cst_79 = arith.constant 2.500000e-01 : f32
    %164 = vector.broadcast %cst_79 : f32 to vector<4x128xf32>
    %165 = arith.mulf %163, %164 : vector<4x128xf32>
    %c16_80 = arith.constant 16 : index
    %c0_81 = arith.constant 0 : index
    %166 = vector.load %arg12[%c16_80, %c0_81] : memref<32x128xf32, #tpu.memory_space<vmem>>, vector<4x128xf32>
    tpu.vector_store %arg12[%c16_80, %c0_81], %165 {strides = array<i32>} : memref<32x128xf32, #tpu.memory_space<vmem>>, vector<4x128xf32>,
    %167 = vector.extract_strided_slice %148 {offsets = [24, 0], sizes = [4, 128], strides = [1, 1]} : vector<32x128xf32> to vector<4x128xf32>
    %168 = vector.extract_strided_slice %148 {offsets = [28, 0], sizes = [4, 128], strides = [1, 1]} : vector<32x128xf32> to vector<4x128xf32>
    %169 = arith.addf %167, %168 : vector<4x128xf32>
    %cst_82 = arith.constant 2.500000e-01 : f32
    %170 = vector.broadcast %cst_82 : f32 to vector<4x128xf32>
    %171 = arith.mulf %169, %170 : vector<4x128xf32>
    %c20 = arith.constant 20 : index
    %c0_83 = arith.constant 0 : index
    %172 = vector.load %arg12[%c20, %c0_83] : memref<32x128xf32, #tpu.memory_space<vmem>>, vector<4x128xf32>
    tpu.vector_store %arg12[%c20, %c0_83], %171 {strides = array<i32>} : memref<32x128xf32, #tpu.memory_space<vmem>>, vector<4x128xf32>,
    %173 = tpu.iota {dimensions = array<i32: 0>} : vector<16x1xi32>
    %c4_i32 = arith.constant 4 : i32
    %c0_i32_84 = arith.constant 0 : i32
    %174 = arith.cmpi eq, %c4_i32, %c0_i32_84 : i32
    %c1_i32_85 = arith.constant 1 : i32
    %175 = arith.select %174, %c1_i32_85, %c4_i32 : i32
    %176 = vector.broadcast %175 : i32 to vector<16x1xi32>
    %177 = arith.remsi %173, %176 : vector<16x1xi32>
    %c0_i32_86 = arith.constant 0 : i32
    %178 = vector.broadcast %c0_i32_86 : i32 to vector<16x1xi32>
    %179 = arith.cmpi ne, %177, %178 : vector<16x1xi32>
    %c0_i32_87 = arith.constant 0 : i32
    %180 = vector.broadcast %c0_i32_87 : i32 to vector<16x1xi32>
    %181 = arith.cmpi slt, %177, %180 : vector<16x1xi32>
    %c0_i32_88 = arith.constant 0 : i32
    %182 = arith.cmpi slt, %175, %c0_i32_88 : i32
    %183 = vector.broadcast %182 : i1 to vector<16x1xi1>
    %184 = vector.broadcast %183 : vector<16x1xi1> to vector<16x1xi1>
    %185 = arith.xori %181, %184 : vector<16x1xi1>
    %186 = arith.andi %185, %179 : vector<16x1xi1>
    %187 = vector.broadcast %175 : i32 to vector<16x1xi32>
    %188 = arith.addi %177, %187 : vector<16x1xi32>
    %189 = arith.select %186, %188, %177 : vector<16x1xi1>, vector<16x1xi32>
    %c3 = arith.constant 3 : index
    %c0_89 = arith.constant 0 : index
    %190 = vector.load %arg12[%c3, %c0_89] : memref<32x128xf32, #tpu.memory_space<vmem>>, vector<16x128xf32>
    %c1_i32_90 = arith.constant 1 : i32
    %191 = vector.broadcast %c1_i32_90 : i32 to vector<16x1xi32>
    %192 = arith.cmpi sge, %189, %191 : vector<16x1xi32>
    %cst_91 = arith.constant 0.000000e+00 : f32
    %193 = vector.shape_cast %192 : vector<16x1xi1> to vector<16x1xi1>
    %194 = vector.broadcast %193 : vector<16x1xi1> to vector<16x128xi1>
    %195 = vector.broadcast %cst_91 : f32 to vector<16x128xf32>
    %196 = arith.select %194, %190, %195 : vector<16x128xi1>, vector<16x128xf32>
    %197 = arith.truncf %196 : vector<16x128xf32> to vector<16x128xbf16>
    %c4 = arith.constant 4 : index
    %c0_92 = arith.constant 0 : index
    %198 = vector.load %arg12[%c4, %c0_92] : memref<32x128xf32, #tpu.memory_space<vmem>>, vector<16x128xf32>
    %199 = arith.truncf %198 : vector<16x128xf32> to vector<16x128xbf16>
    %c5 = arith.constant 5 : index
    %c0_93 = arith.constant 0 : index
    %200 = vector.load %arg12[%c5, %c0_93] : memref<32x128xf32, #tpu.memory_space<vmem>>, vector<16x128xf32>
    %c2_i32 = arith.constant 2 : i32
    %201 = vector.broadcast %c2_i32 : i32 to vector<16x1xi32>
    %202 = arith.cmpi sle, %189, %201 : vector<16x1xi32>
    %cst_94 = arith.constant 0.000000e+00 : f32
    %203 = vector.shape_cast %202 : vector<16x1xi1> to vector<16x1xi1>
    %204 = vector.broadcast %203 : vector<16x1xi1> to vector<16x128xi1>
    %205 = vector.broadcast %cst_94 : f32 to vector<16x128xf32>
    %206 = arith.select %204, %200, %205 : vector<16x128xi1>, vector<16x128xf32>
    %207 = arith.truncf %206 : vector<16x128xf32> to vector<16x128xbf16>
    %c7_95 = arith.constant 7 : index
    %c0_96 = arith.constant 0 : index
    %208 = vector.load %arg12[%c7_95, %c0_96] : memref<32x128xf32, #tpu.memory_space<vmem>>, vector<16x128xf32>
    %c1_i32_97 = arith.constant 1 : i32
    %209 = vector.broadcast %c1_i32_97 : i32 to vector<16x1xi32>
    %210 = arith.cmpi sge, %189, %209 : vector<16x1xi32>
    %cst_98 = arith.constant 0.000000e+00 : f32
    %211 = vector.shape_cast %210 : vector<16x1xi1> to vector<16x1xi1>
    %212 = vector.broadcast %211 : vector<16x1xi1> to vector<16x128xi1>
    %213 = vector.broadcast %cst_98 : f32 to vector<16x128xf32>
    %214 = arith.select %212, %208, %213 : vector<16x128xi1>, vector<16x128xf32>
    %215 = arith.truncf %214 : vector<16x128xf32> to vector<16x128xbf16>
    %c8_99 = arith.constant 8 : index
    %c0_100 = arith.constant 0 : index
    %216 = vector.load %arg12[%c8_99, %c0_100] : memref<32x128xf32, #tpu.memory_space<vmem>>, vector<16x128xf32>
    %217 = arith.truncf %216 : vector<16x128xf32> to vector<16x128xbf16>
    %c9_101 = arith.constant 9 : index
    %c0_102 = arith.constant 0 : index
    %218 = vector.load %arg12[%c9_101, %c0_102] : memref<32x128xf32, #tpu.memory_space<vmem>>, vector<16x128xf32>
    %c2_i32_103 = arith.constant 2 : i32
    %219 = vector.broadcast %c2_i32_103 : i32 to vector<16x1xi32>
    %220 = arith.cmpi sle, %189, %219 : vector<16x1xi32>
    %cst_104 = arith.constant 0.000000e+00 : f32
    %221 = vector.shape_cast %220 : vector<16x1xi1> to vector<16x1xi1>
    %222 = vector.broadcast %221 : vector<16x1xi1> to vector<16x128xi1>
    %223 = vector.broadcast %cst_104 : f32 to vector<16x128xf32>
    %224 = arith.select %222, %218, %223 : vector<16x128xi1>, vector<16x128xf32>
    %225 = arith.truncf %224 : vector<16x128xf32> to vector<16x128xbf16>
    %c11 = arith.constant 11 : index
    %c0_105 = arith.constant 0 : index
    %226 = vector.load %arg12[%c11, %c0_105] : memref<32x128xf32, #tpu.memory_space<vmem>>, vector<16x128xf32>
    %c1_i32_106 = arith.constant 1 : i32
    %227 = vector.broadcast %c1_i32_106 : i32 to vector<16x1xi32>
    %228 = arith.cmpi sge, %189, %227 : vector<16x1xi32>
    %cst_107 = arith.constant 0.000000e+00 : f32
    %229 = vector.shape_cast %228 : vector<16x1xi1> to vector<16x1xi1>
    %230 = vector.broadcast %229 : vector<16x1xi1> to vector<16x128xi1>
    %231 = vector.broadcast %cst_107 : f32 to vector<16x128xf32>
    %232 = arith.select %230, %226, %231 : vector<16x128xi1>, vector<16x128xf32>
    %233 = arith.truncf %232 : vector<16x128xf32> to vector<16x128xbf16>
    %c12_108 = arith.constant 12 : index
    %c0_109 = arith.constant 0 : index
    %234 = vector.load %arg12[%c12_108, %c0_109] : memref<32x128xf32, #tpu.memory_space<vmem>>, vector<16x128xf32>
    %235 = arith.truncf %234 : vector<16x128xf32> to vector<16x128xbf16>
    %c13 = arith.constant 13 : index
    %c0_110 = arith.constant 0 : index
    %236 = vector.load %arg12[%c13, %c0_110] : memref<32x128xf32, #tpu.memory_space<vmem>>, vector<16x128xf32>
    %c2_i32_111 = arith.constant 2 : i32
    %237 = vector.broadcast %c2_i32_111 : i32 to vector<16x1xi32>
    %238 = arith.cmpi sle, %189, %237 : vector<16x1xi32>
    %cst_112 = arith.constant 0.000000e+00 : f32
    %239 = vector.shape_cast %238 : vector<16x1xi1> to vector<16x1xi1>
    %240 = vector.broadcast %239 : vector<16x1xi1> to vector<16x128xi1>
    %241 = vector.broadcast %cst_112 : f32 to vector<16x128xf32>
    %242 = arith.select %240, %236, %241 : vector<16x128xi1>, vector<16x128xf32>
    %243 = arith.truncf %242 : vector<16x128xf32> to vector<16x128xbf16>
    %244 = tpu.concatenate %197, %199, %207, %215, %217, %225, %233, %235, %243 in 1 : vector<16x128xbf16>, vector<16x128xbf16>, vector<16x128xbf16>, vector<16x128xbf16>, vector<16x128xbf16>, vector<16x128xbf16>, vector<16x128xbf16>, vector<16x128xbf16>, vector<16x128xbf16> -> vector<16x1152xbf16>
    %c0_113 = arith.constant 0 : index
    %c0_114 = arith.constant 0 : index
    %245 = vector.load %arg6[%c0_113, %c0_114] : memref<1152x256xbf16, #tpu.memory_space<vmem>>, vector<1152x256xbf16>
    %cst_115 = arith.constant dense<0.000000e+00> : vector<16x256xf32>
    %246 = tpu.matmul %244, %245, %cst_115 {dimension_numbers = #tpu.dot_dimension_numbers<[1], [0], [0], [1], [0, 0, 1, 1], [], []>} : vector<16x1152xbf16>, vector<1152x256xbf16>, vector<16x256xf32> -> vector<16x256xf32>
    %c0_116 = arith.constant 0 : index
    %c0_117 = arith.constant 0 : index
    %247 = vector.load %arg7[%c0_116, %c0_117] : memref<1x256xf32, #tpu.memory_space<vmem>>, vector<1x256xf32>
    %248 = vector.broadcast %247 : vector<1x256xf32> to vector<16x256xf32>
    %249 = arith.addf %246, %248 : vector<16x256xf32>
    %cst_118 = arith.constant 0.000000e+00 : f32
    %250 = vector.broadcast %cst_118 : f32 to vector<16x256xf32>
    %251 = arith.maximumf %249, %250 : vector<16x256xf32>
    %c0_119 = arith.constant 0 : index
    %c0_120 = arith.constant 0 : index
    %252 = vector.load %arg8[%c0_119, %c0_120] : memref<16x256xf32, #tpu.memory_space<vmem>>, vector<16x256xf32>
    tpu.vector_store %arg8[%c0_119, %c0_120], %251 {strides = array<i32>} : memref<16x256xf32, #tpu.memory_space<vmem>>, vector<16x256xf32>,
    return
  }
  func.func @transform_0(%arg0: i32) -> (i32, i32) {
    %c0_i32 = arith.constant 0 : i32
    %c0_i32_0 = arith.constant 0 : i32
    return %arg0, %c0_i32 : i32, i32
  }
  func.func @transform_1(%arg0: i32) -> (i32, i32) {
    %c0_i32 = arith.constant 0 : i32
    %c0_i32_0 = arith.constant 0 : i32
    %c0_i32_1 = arith.constant 0 : i32
    return %c0_i32, %c0_i32_0 : i32, i32
  }
  func.func @transform_2(%arg0: i32) -> (i32, i32) {
    %c0_i32 = arith.constant 0 : i32
    %c0_i32_0 = arith.constant 0 : i32
    %c0_i32_1 = arith.constant 0 : i32
    return %c0_i32, %c0_i32_0 : i32, i32
  }
  func.func @transform_3(%arg0: i32) -> (i32, i32) {
    %c0_i32 = arith.constant 0 : i32
    %c0_i32_0 = arith.constant 0 : i32
    %c0_i32_1 = arith.constant 0 : i32
    return %c0_i32, %c0_i32_0 : i32, i32
  }
  func.func @transform_4(%arg0: i32) -> (i32, i32) {
    %c0_i32 = arith.constant 0 : i32
    %c0_i32_0 = arith.constant 0 : i32
    %c0_i32_1 = arith.constant 0 : i32
    return %c0_i32, %c0_i32_0 : i32, i32
  }
  func.func @transform_5(%arg0: i32) -> (i32, i32) {
    %c0_i32 = arith.constant 0 : i32
    %c0_i32_0 = arith.constant 0 : i32
    %c0_i32_1 = arith.constant 0 : i32
    return %c0_i32, %c0_i32_0 : i32, i32
  }
  func.func @transform_6(%arg0: i32) -> (i32, i32) {
    %c0_i32 = arith.constant 0 : i32
    %c0_i32_0 = arith.constant 0 : i32
    %c0_i32_1 = arith.constant 0 : i32
    return %c0_i32, %c0_i32_0 : i32, i32
  }
  func.func @transform_7(%arg0: i32) -> (i32, i32) {
    %c0_i32 = arith.constant 0 : i32
    %c0_i32_0 = arith.constant 0 : i32
    return %arg0, %c0_i32 : i32, i32
  }
}

</mosaic_0001>

<bundles_post_ra>
// kernel: encoder_forward.1
= control target key start
LH: loop header
LB: loop body
LE: loop exit
PB: predicated region body
PF: predicated region fallthrough
CT: control target
= control target key end

     0   :  { %s3712_s24 = smov 0   ;;  %s4797_s0 = inlined_call_operand.vmem [shape: bf16[512,64], index: 0, kind: input, shape index: {}]   ;;  %s4798_s1 = inlined_call_operand.vmem [shape: bf16[64,64], index: 1, kind: input, shape index: {}]   ;;  %s4799_s2 = inlined_call_operand.vmem [shape: f32[1,64], index: 2, kind: input, shape index: {}]   ;;  %s4800_s3 = inlined_call_operand.vmem [shape: bf16[576,128], index: 3, kind: input, shape index: {}]   ;;  %s4801_s4 = inlined_call_operand.vmem [shape: f32[1,128], index: 4, kind: input, shape index: {}]   ;;  %s4802_s5 = inlined_call_operand.vmem [shape: bf16[1152,256], index: 5, kind: input, shape index: {}]   ;;  %s4803_s6 = inlined_call_operand.vmem [shape: f32[1,256], index: 6, kind: input, shape index: {}]   ;;  %s4804_s7 = inlined_call_operand.vmem [shape: f32[32,256], index: 7, kind: output, shape index: {}]  }
   0x1 LB: > { %s2941_s25 = sadd.s32 4294967295, %s3667_s24   ;;  %p2945_p0 = scmp.ge.s32.totalorder %s3667_s24, 1  ;;  %s3667_s24 = sphi %s3712_s24, %s17_s24  }
   0x2   : > { %p238_p1 = scmp.lt.s32.totalorder %s3667_s24, 3 }
   0x4   : > { %p239_p2 = pnand %p2945_p0, %p238_p1 }
   0x5   : > { %v3389_v0 = vld [vmem:[%s4798_s1] sm:$0xff] (!%p239_p2)   ;;  %s2946_s28 = sshll.u32 (!%p239_p2), %s2941_s25, 5  ;;  %v3390_v1 = vld [vmem:[%s4798_s1 + $0x8] sm:$0xff] (!%p239_p2)   ;;  %v3391_v2 = vld [vmem:[%s4798_s1 + $0x10] sm:$0xff] (!%p239_p2)   ;;  %vm436_vm0 = vcmask (!%p239_p2), 523264   ;;  %v3669_v20 = vmov (!%p239_p2), 0.0   ;;  %v785_v51 = vlaneseq (!%p239_p2) }
   0x6   : > { %242 = sbr.rel (%p239_p2) target bundleno = 1040 (0x410), region = 48  ;;  %p272_p3 = scmp.lt.s32.totalorder (!%p239_p2), %s2946_s28, 63  ;;  %3302 = vmatprep.subr.bf16.mxu0 (!%p239_p2), %v3389_v0  ;;  %v3392_v4 = vld [vmem:[%s4798_s1 + $0x18] sm:$0xff] (!%p239_p2)   ;;  %646 = vst.msk [vmem:[#allocation3] sm:$0xff] (!%p239_p2), %vm436_vm0, %v3669_v20  ;;  %647 = vst.msk [vmem:[#allocation3 + $0x8] sm:$0xff] (!%p239_p2), %vm436_vm0, %v3669_v20  ;;  %v3409_v21 = vld [vmem:[%s4800_s3 + $0x100] sm:$0xff] (!%p239_p2)  }
   0x7   : > { %3303 = vmatpush3.bf16.msra.mxu0 (!%p239_p2), %v3389_v0  ;;  %648 = vst.msk [vmem:[#allocation3 + $0x50] sm:$0xff] (!%p239_p2), %vm436_vm0, %v3669_v20  ;;  %649 = vst.msk [vmem:[#allocation3 + $0x58] sm:$0xff] (!%p239_p2), %vm436_vm0, %v3669_v20  ;;  %v3410_v22 = vld [vmem:[%s4800_s3 + $0x108] sm:$0xff] (!%p239_p2)   ;;  %v3411_v23 = vld [vmem:[%s4800_s3 + $0x110] sm:$0xff] (!%p239_p2)   ;;  %v3849_v62 = vshrl.u32 (!%p239_p2), %v785_v51, 7  ;;  %s3670_s16 = smov (!%p239_p2), 64  }
   0x8   : > { %3304 = vmatprep.subr.bf16.mxu0 (!%p239_p2), %v3390_v1  ;;  %1659 = vst [vmem:[#allocation5] sm:$0xff] (!%p239_p2), %v3669_v20  ;;  %1660 = vst [vmem:[#allocation5 + $0x18] sm:$0xff] (!%p239_p2), %v3669_v20  ;;  %v3412_v24 = vld [vmem:[%s4800_s3 + $0x118] sm:$0xff] (!%p239_p2)   ;;  %v3413_v25 = vld [vmem:[%s4800_s3 + $0x40] sm:$0xff] (!%p239_p2)   ;;  %s2948_s26 = sshll.u32 (!%p239_p2), %s2941_s25, 1 }
   0x9   : > { %v3414_v26 = vld [vmem:[%s4800_s3] sm:$0xff] (!%p239_p2)   ;;  %v3415_v27 = vld [vmem:[%s4800_s3 + $0x48] sm:$0xff] (!%p239_p2)   ;;  %3214 = vmatprep.subr.bf16.mxu1 (!%p239_p2), %v3413_v25  ;;  %v3417_v29 = vld [vmem:[%s4800_s3 + $0x50] sm:$0xff] (!%p239_p2)   ;;  %p278_p4 = scmp.lt.s32.totalorder (!%p239_p2), %s2948_s26, 3 }
   0xa   : > { %3215 = vmatpush3.bf16.msra.mxu1 (!%p239_p2), %v3414_v26  ;;  %v3416_v28 = vld [vmem:[%s4800_s3 + $0x8] sm:$0xff] (!%p239_p2)   ;;  %v3418_v30 = vld [vmem:[%s4800_s3 + $0x10] sm:$0xff] (!%p239_p2)   ;;  %v3419_v31 = vld [vmem:[%s4800_s3 + $0x58] sm:$0xff] (!%p239_p2)  }
   0xb   : > { %3305 = vmatpush3.bf16.msra.mxu0 (!%p239_p2), %v3390_v1  ;;  %3216 = vmatprep.subr.bf16.mxu1 (!%p239_p2), %v3415_v27  ;;  %v3420_v32 = vld [vmem:[%s4800_s3 + $0x18] sm:$0xff] (!%p239_p2)   ;;  %v3421_v33 = vld [vmem:[%s4800_s3 + $0x60] sm:$0xff] (!%p239_p2)   ;;  %v3423_v35 = vld [vmem:[%s4800_s3 + $0x68] sm:$0xff] (!%p239_p2)   ;;  %v3875_v27 = vadd.s32 (!%p239_p2), 16, %v3849_v62 }
   0xc   : > { %3306 = vmatprep.subr.bf16.mxu0 (!%p239_p2), %v3391_v2  ;;  %v3422_v34 = vld [vmem:[%s4800_s3 + $0x20] sm:$0xff] (!%p239_p2)   ;;  %v3424_v36 = vld [vmem:[%s4800_s3 + $0x28] sm:$0xff] (!%p239_p2)   ;;  %v3425_v37 = vld [vmem:[%s4800_s3 + $0x70] sm:$0xff] (!%p239_p2)  }
   0xd   : > { %s4842_s28 = smov (!%p272_p3, %s2946_s28), 63  ;;  %v3426_v38 = vld [vmem:[%s4800_s3 + $0x30] sm:$0xff]   ;;  %v3832_v39 = vld [vmem:[%s4799_s2] ss:$0 sm:$0xff]  ;;  %s4844_s26 = smov (!%p278_p4, %s2948_s26), 3 }
   0xe   : > { %s2947_s10 = sshll.u32 %s4842_s28, 2  ;;  %3217 = vmatpush3.bf16.msra.mxu1 %v3416_v28  ;;  %s3193_s29 = sshll.u32 %s4844_s26, 4 }
   0xf   : > { %s3734_s13 = scalar_lea.vmem %s4797_s0, %s2947_s10  ;;  %3307 = vmatpush3.bf16.msra.mxu0 %v3391_v2  ;;  %3218 = vmatprep.subr.bf16.mxu1 %v3417_v29  ;;  %s282_s8 = scalar_lea.vmem %s4804_s7, %s3193_s29 }
  0x10   : > { %v3393_v3 = vld [vmem:[%s3734_s13] sm:$0xff]   ;;  %3308 = vmatprep.subr.bf16.mxu0 %v3392_v4  ;;  %v3394_v5 = vld [vmem:[%s3734_s13 + $0x8] sm:$0xff]   ;;  %v3395_v6 = vld [vmem:[%s3734_s13 + $0x10] sm:$0xff]  }
  0x11   : > { %3310 = vmatprep.mubr.msk.bf16.mxu0 %vm436_vm0, %v3393_v3  ;;  %v3396_v7 = vld [vmem:[%s3734_s13 + $0x18] sm:$0xff]   ;;  %v3397_v8 = vld [vmem:[%s3734_s13 + $0x20] sm:$0xff]   ;;  %v3398_v9 = vld [vmem:[%s3734_s13 + $0x28] sm:$0xff]  }
  0x12   : > { %v3399_v10 = vld [vmem:[%s3734_s13 + $0x30] sm:$0xff]   ;;  %v3400_v11 = vld [vmem:[%s3734_s13 + $0x38] sm:$0xff]   ;;  %v3401_v12 = vld [vmem:[%s3734_s13 + $0x40] sm:$0xff]   ;;  %3219 = vmatpush3.bf16.msra.mxu1 %v3418_v30 }
  0x13   : > { %3309 = vmatpush3.bf16.msra.mxu0 %v3392_v4  ;;  %v3402_v13 = vld [vmem:[%s3734_s13 + $0x48] sm:$0xff]   ;;  %v3403_v14 = vld [vmem:[%s3734_s13 + $0x50] sm:$0xff]   ;;  %v3404_v15 = vld [vmem:[%s3734_s13 + $0x58] sm:$0xff]   ;;  %3220 = vmatprep.subr.bf16.mxu1 %v3419_v31  ;;  %v3854_v4 = vadd.s32 8, %v3849_v62 }
  0x14   : > { %v3405_v16 = vld [vmem:[%s3734_s13 + $0x60] sm:$0xff]   ;;  %v3406_v17 = vld [vmem:[%s3734_s13 + $0x68] sm:$0xff]   ;;  %v3407_v18 = vld [vmem:[%s3734_s13 + $0x70] sm:$0xff]   ;;  %3342 = vmatprep.subr.bf16.mxu0 %v3409_v21 }
  0x15   : > { %v3408_v19 = vld [vmem:[%s3734_s13 + $0x78] sm:$0xff]  }
  0x16   : > { %3311 = vmatmul.mubr.msk.bf16.vlgmr.msra.gmra.mrb[0].mxu0 %vm436_vm0, %v3394_v5  ;;  %3221 = vmatpush3.bf16.msra.mxu1 %v3420_v32 }
  0x17   : > { %3314 = vmatprep.mubr.msk.bf16.mxu0 %vm436_vm0, %v3395_v6  ;;  %3343 = vmatpush3.bf16.msra.mxu0 %v3409_v21 }
  0x18   : > { %3344 = vmatprep.subr.bf16.mxu0 %v3410_v22  ;;  %3222 = vmatprep.subr.bf16.mxu1 %v3421_v33 }
  0x1a   : > { %3223 = vmatpush3.bf16.msra.mxu1 %v3422_v34 }
  0x1b   : > { %3345 = vmatpush3.bf16.msra.mxu0 %v3410_v22  ;;  %3224 = vmatprep.subr.bf16.mxu1 %v3423_v35  ;;  %v3432_v22 = vld [vmem:[%s4800_s3 + $0x88] sm:$0xff]  }
  0x1c   : > { %3346 = vmatprep.subr.bf16.mxu0 %v3411_v23 }
  0x1e   : > { %3315 = vmatmul.mubr.msk.bf16.gmra.mrb[4].mxu0 %vm436_vm0, %v3396_v7  ;;  %3225 = vmatpush3.bf16.msra.mxu1 %v3424_v36 }
  0x1f   : > { %3318 = vmatprep.mubr.msk.bf16.mxu0 %vm436_vm0, %v3397_v8  ;;  %3347 = vmatpush3.bf16.msra.mxu0 %v3411_v23  ;;  %v3427_v23 = vld [vmem:[%s4800_s3 + $0x78] sm:$0xff]  }
  0x20   : > { %3348 = vmatprep.subr.bf16.mxu0 %v3412_v24  ;;  %3226 = vmatprep.subr.bf16.mxu1 %v3425_v37 }
  0x22   : > { %3227 = vmatpush3.bf16.msra.mxu1 %v3426_v38  ;;  %v798_v38 = vand.u32 7, %v3849_v62 }
  0x23   : > { %3349 = vmatpush3.bf16.msra.mxu0 %v3412_v24  ;;  %3228 = vmatprep.subr.bf16.mxu1 %v3427_v23 }
  0x24   : > { %vm3895_vm2 = vcmp.ge.s32.totalorder %v798_v38, 1  ;;  %vm3899_vm3 = vcmp.le.s32.totalorder %v798_v38, 6 }
  0x26   : > { %3319 = vmatmul.mubr.msk.bf16.gmra.mrb[8].mxu0 %vm436_vm0, %v3398_v9 }
  0x27   : > { %3322 = vmatprep.mubr.msk.bf16.mxu0 %vm436_vm0, %v3399_v10 }
  0x2e   : > { %3323 = vmatmul.mubr.msk.bf16.gmra.mrb[12].mxu0 %vm436_vm0, %v3400_v11 }
  0x2f   : > { %3326 = vmatprep.mubr.msk.bf16.mxu0 %vm436_vm0, %v3401_v12 }
  0x36   : > { %3327 = vmatmul.mubr.msk.bf16.gmra.mrb[16].mxu0 %vm436_vm0, %v3402_v13 }
  0x37   : > { %3330 = vmatprep.mubr.msk.bf16.mxu0 %vm436_vm0, %v3403_v14 }
  0x3e   : > { %3331 = vmatmul.mubr.msk.bf16.gmra.mrb[20].mxu0 %vm436_vm0, %v3404_v15 }
  0x3f   : > { %3334 = vmatprep.mubr.msk.bf16.mxu0 %vm436_vm0, %v3405_v16  ;;  %v805_v16 = vand.u32 7, %v3854_v4 }
  0x41   : > { %vm3866_vm1 = vcmp.ge.s32.totalorder %v805_v16, 1  ;;  %vm3915_vm5 = vcmp.le.s32.totalorder %v805_v16, 6 }
  0x46   : > { %3335 = vmatmul.mubr.msk.bf16.gmra.mrb[24].mxu0 %vm436_vm0, %v3406_v17 }
  0x47   : > { %3338 = vmatprep.mubr.msk.bf16.mxu0 %vm436_vm0, %v3407_v18 }
  0x4e   : > { %3339 = vmatmul.mubr.msk.bf16.gmra.mrb[28].mxu0 %vm436_vm0, %v3408_v19 }
  0xe9   : > { %v3312_v40 = vpop.f32.mrb[0].mxu0 }
  0xea   : > { %v528_v41 = vadd.f32 %v3312_v40, %v3832_v39  ;;  %v519_v42 = vpop.f32.mrb[1].mxu0  ;;  %v3428_v40 = vld [vmem:[%s4800_s3 + $0x38] sm:$0xff]  }
  0xeb   : > { %v520_v43 = vadd.f32 %v3832_v39, %v519_v42  ;;  %v3313_v44 = vpop.f32.mrb[2].mxu0  ;;  %v812_v42 = vand.u32 7, %v3875_v27  ;;  %3229 = vmatpush3.bf16.msra.mxu1 %v3428_v40 }
  0xec   : > { %652 = vst.msk [vmem:[#allocation2 + $0x10] sm:$0xff] %vm436_vm0, %v528_v41  ;;  %v531_v45 = vadd.f32 %v3313_v44, %v3832_v39  ;;  %v522_v46 = vpop.f32.mrb[3].mxu0 }
  0xed   : > { %650 = vst.msk [vmem:[#allocation2] sm:$0xff] %vm436_vm0, %v520_v43  ;;  %v523_v47 = vadd.f32 %v3832_v39, %v522_v46  ;;  %vm3909_vm4 = vcmp.ge.s32.totalorder %v812_v42, 1  ;;  %vm3961_vm7 = vcmp.le.s32.totalorder %v812_v42, 6 }
  0xee   : > { %653 = vst.msk [vmem:[#allocation2 + $0x18] sm:$0xff] %vm436_vm0, %v531_v45 }
  0xef   : > { %651 = vst.msk [vmem:[#allocation2 + $0x8] sm:$0xff] %vm436_vm0, %v523_v47  ;;  %v3431_v47 = vld [vmem:[%s4800_s3 + $0xc8] sm:$0xff]  }
  0xf1   : > { %v3316_v48 = vpop.f32.mrb[4].mxu0 }
  0xf2   : > { %v544_v49 = vadd.f32 %v3316_v48, %v3832_v39  ;;  %v535_v50 = vpop.f32.mrb[5].mxu0 }
  0xf3   : > { %v536_v52 = vadd.f32 %v3832_v39, %v535_v50  ;;  %v3317_v53 = vpop.f32.mrb[6].mxu0 }
  0xf4   : > { %656 = vst.msk [vmem:[#allocation2 + $0x30] sm:$0xff] %vm436_vm0, %v544_v49  ;;  %v547_v54 = vadd.f32 %v3317_v53, %v3832_v39  ;;  %v538_v55 = vpop.f32.mrb[7].mxu0  ;;  %v3907_v53 = vadd.s32 24, %v3849_v62 }
  0xf5   : > { %v684_v56 = vld [vmem:[#allocation2 + $0x10] ss:$2 sm:$0xff]  ;;  %v716_v57 = vld [vmem:[#allocation2 + $0x11] ss:$2 sm:$0xff]  ;;  %654 = vst.msk [vmem:[#allocation2 + $0x20] sm:$0xff] %vm436_vm0, %v536_v52  ;;  %v539_v58 = vadd.f32 %v3832_v39, %v538_v55 }
  0xf6   : > { %v746_v59 = vadd.f32 %v716_v57, %v684_v56  ;;  %v682_v60 = vld [vmem:[#allocation2] ss:$2 sm:$0xff]  ;;  %v714_v61 = vld [vmem:[#allocation2 + $0x1] ss:$2 sm:$0xff]  ;;  %657 = vst.msk [vmem:[#allocation2 + $0x38] sm:$0xff] %vm436_vm0, %v547_v54 }
  0xf7   : > { %v745_v63 = vadd.f32 %v714_v61, %v682_v60  ;;  %655 = vst.msk [vmem:[#allocation2 + $0x28] sm:$0xff] %vm436_vm0, %v539_v58 }
  0xf9   : > { %v761_v0 = vadd.f32 %v746_v59, %v745_v63  ;;  %v3320_v1 = vpop.f32.mrb[8].mxu0 }
  0xfa   : > { %v560_v2 = vadd.f32 %v3320_v1, %v3832_v39  ;;  %v551_v3 = vpop.f32.mrb[9].mxu0 }
  0xfb   : > { %v552_v5 = vadd.f32 %v3832_v39, %v551_v3  ;;  %v3321_v6 = vpop.f32.mrb[10].mxu0  ;;  %v762_v7 = vmul.f32 0.25, %v761_v0 }
  0xfc   : > { %660 = vst.msk [vmem:[#allocation2 + $0x50] sm:$0xff] %vm436_vm0, %v560_v2  ;;  %v563_v8 = vadd.f32 %v3321_v6, %v3832_v39  ;;  %v554_v9 = vpop.f32.mrb[11].mxu0 }
  0xfd   : > { %v688_v10 = vld [vmem:[#allocation2 + $0x30] ss:$2 sm:$0xff]  ;;  %v720_v11 = vld [vmem:[#allocation2 + $0x31] ss:$2 sm:$0xff]  ;;  %658 = vst.msk [vmem:[#allocation2 + $0x40] sm:$0xff] %vm436_vm0, %v552_v5  ;;  %v555_v12 = vadd.f32 %v3832_v39, %v554_v9  ;;  %763 = vst.msk [vmem:[#allocation3 + $0x10] sm:$0xff] %vm436_vm0, %v762_v7 }
  0xfe   : > { %v748_v13 = vadd.f32 %v720_v11, %v688_v10  ;;  %v686_v14 = vld [vmem:[#allocation2 + $0x20] ss:$2 sm:$0xff]  ;;  %v718_v15 = vld [vmem:[#allocation2 + $0x21] ss:$2 sm:$0xff]  ;;  %661 = vst.msk [vmem:[#allocation2 + $0x58] sm:$0xff] %vm436_vm0, %v563_v8 }
  0xff   : > { %v747_v17 = vadd.f32 %v718_v15, %v686_v14  ;;  %659 = vst.msk [vmem:[#allocation2 + $0x48] sm:$0xff] %vm436_vm0, %v555_v12  ;;  %v934_v12 = vld [vmem:[#allocation3 + $0x8] sm:$0xff] }
 0x101   : > { %v764_v18 = vadd.f32 %v748_v13, %v747_v17  ;;  %v3324_v19 = vpop.f32.mrb[12].mxu0  ;;  %v819_v13 = vand.u32 7, %v3907_v53 }
 0x102   : > { %v576_v20 = vadd.f32 %v3324_v19, %v3832_v39  ;;  %v567_v21 = vpop.f32.mrb[13].mxu0  ;;  %v3947_v19 = vadd.s32 32, %v3849_v62 }
 0x103   : > { %v765_v24 = vmul.f32 0.25, %v764_v18  ;;  %v568_v25 = vadd.f32 %v3832_v39, %v567_v21  ;;  %v3325_v26 = vpop.f32.mrb[14].mxu0  ;;  %vm3952_vm6 = vcmp.ge.s32.totalorder %v819_v13, 1  ;;  %vm3992_vm9 = vcmp.le.s32.totalorder %v819_v13, 6 }
 0x104   : > { %664 = vst.msk [vmem:[#allocation2 + $0x70] sm:$0xff] %vm436_vm0, %v576_v20  ;;  %v579_v28 = vadd.f32 %v3325_v26, %v3832_v39  ;;  %v570_v29 = vpop.f32.mrb[15].mxu0  ;;  %v3879_v30 = vld [vmem:[#allocation3 + $0xf] sm:$0xff]  ;;  %v826_v38 = vand.u32 7, %v3947_v19 }
 0x105   : > { %766 = vst.msk [vmem:[#allocation3 + $0x18] sm:$0xff] %vm436_vm0, %v765_v24  ;;  %v692_v31 = vld [vmem:[#allocation2 + $0x50] ss:$2 sm:$0xff]  ;;  %v724_v32 = vld [vmem:[#allocation2 + $0x51] ss:$2 sm:$0xff]  ;;  %662 = vst.msk [vmem:[#allocation2 + $0x60] sm:$0xff] %vm436_vm0, %v568_v25  ;;  %v571_v33 = vadd.f32 %v3832_v39, %v570_v29 }
 0x106   : > { %v923_v34 = vsel %vm3866_vm1, %v3879_v30, 0.0  ;;  %v750_v35 = vadd.f32 %v724_v32, %v692_v31  ;;  %v690_v36 = vld [vmem:[#allocation2 + $0x40] ss:$2 sm:$0xff]  ;;  %v722_v37 = vld [vmem:[#allocation2 + $0x41] ss:$2 sm:$0xff]  ;;  %665 = vst.msk [vmem:[#allocation2 + $0x78] sm:$0xff] %vm436_vm0, %v579_v28 }
 0x107   : > { %v749_v41 = vadd.f32 %v722_v37, %v690_v36  ;;  %663 = vst.msk [vmem:[#allocation2 + $0x68] sm:$0xff] %vm436_vm0, %v571_v33  ;;  %v3904_v52 = vld [vmem:[#allocation3 + $0x10] sm:$0xff]  ;;  %v991_v2 = vsel %vm3895_vm2, %v3879_v30, 0.0  ;;  %vm3987_vm8 = vcmp.ge.s32.totalorder %v826_v38, 1  ;;  %vm4060_vm11 = vcmp.le.s32.totalorder %v826_v38, 6 }
 0x108   : > { %v946_v55 = vld [vmem:[#allocation3 + $0x9] sm:$0xff]  ;;  %v942_v23 = vpack.c.bf16 %v3904_v52, %v934_v12 }
 0x109   : > { %v767_v43 = vadd.f32 %v750_v35, %v749_v41  ;;  %v3328_v44 = vpop.f32.mrb[16].mxu0  ;;  %v978_v14 = vsel %vm3899_vm3, %v946_v55, 0.0  ;;  %v3433_v30 = vld [vmem:[%s4800_s3 + $0xd0] sm:$0xff]  }
 0x10a   : > { %v592_v45 = vadd.f32 %v3328_v44, %v3832_v39  ;;  %v583_v46 = vpop.f32.mrb[17].mxu0 }
 0x10b   : > { %v768_v49 = vmul.f32 0.25, %v767_v43  ;;  %v584_v50 = vadd.f32 %v3832_v39, %v583_v46  ;;  %v3329_v51 = vpop.f32.mrb[18].mxu0 }
 0x10c   : > { %668 = vst.msk [vmem:[#allocation2 + $0x90] sm:$0xff] %vm436_vm0, %v592_v45  ;;  %v595_v56 = vadd.f32 %v3329_v51, %v3832_v39  ;;  %v586_v57 = vpop.f32.mrb[19].mxu0  ;;  %v892_v58 = vld [vmem:[#allocation3 + $0x17] sm:$0xff] }
 0x10d   : > { %v3919_v60 = vld [vmem:[#allocation3 + $0x18] sm:$0xff]  ;;  %769 = vst.msk [vmem:[#allocation3 + $0x20] sm:$0xff] %vm436_vm0, %v768_v49  ;;  %666 = vst.msk [vmem:[#allocation2 + $0x80] sm:$0xff] %vm436_vm0, %v584_v50  ;;  %v587_v1 = vadd.f32 %v3832_v39, %v586_v57  ;;  %v992_v3 = vsel %vm3866_vm1, %v892_v58, 0.0  ;;  %v924_v10 = vsel %vm3909_vm4, %v892_v58, 0.0  ;;  %v1022_v46 = vsel %vm3895_vm2, %v892_v58, 0.0 }
 0x10e   : > { %v3921_v61 = vld [vmem:[#allocation3 + $0x11] sm:$0xff]  ;;  %v1004_v5 = vpack.c.bf16 %v3919_v60, %v3904_v52  ;;  %v694_v7 = vld [vmem:[#allocation2 + $0x60] ss:$2 sm:$0xff]  ;;  %v726_v8 = vld [vmem:[#allocation2 + $0x61] ss:$2 sm:$0xff]  ;;  %669 = vst.msk [vmem:[#allocation2 + $0x98] sm:$0xff] %vm436_vm0, %v595_v56  ;;  %v999_v9 = vpack.c.bf16 %v992_v3, %v991_v2 }
 0x10f   : > { %v696_v63 = vld [vmem:[#allocation2 + $0x70] ss:$2 sm:$0xff]  ;;  %v728_v0 = vld [vmem:[#allocation2 + $0x71] ss:$2 sm:$0xff]  ;;  %v751_v11 = vadd.f32 %v726_v8, %v694_v7  ;;  %667 = vst.msk [vmem:[#allocation2 + $0x88] sm:$0xff] %vm436_vm0, %v587_v1  ;;  %v979_v15 = vsel %vm3915_vm5, %v3921_v61, 0.0 }
 0x110   : > { %v752_v6 = vadd.f32 %v728_v0, %v696_v63  ;;  %1065 = vrot.lane.b32.xlu0 %v999_v9, %s3670_s16  ;;  %v3944_v16 = vpack.c.bf16 %v979_v15, %v978_v14  ;;  %v3429_v7 = vld [vmem:[%s4800_s3 + $0xc0] sm:$0xff]  }
 0x111   : > { %v3332_v18 = vpop.f32.mrb[20].mxu0  ;;  %3254 = vmatprep.subr.bf16.mxu1 %v3429_v7  ;;  %v792_v7 = vadd.s32 48, %v3849_v62 }
 0x112   : > { %v770_v17 = vadd.f32 %v752_v6, %v751_v11  ;;  %v608_v20 = vadd.f32 %v3332_v18, %v3832_v39  ;;  %v599_v21 = vpop.f32.mrb[21].mxu0  ;;  %v3999_v6 = vadd.s32 40, %v3849_v62 }
 0x113   : > { %v600_v25 = vadd.f32 %v3832_v39, %v599_v21  ;;  %v3333_v26 = vpop.f32.mrb[22].mxu0 }
 0x114   : > { %v771_v24 = vmul.f32 0.25, %v770_v17  ;;  %672 = vst.msk [vmem:[#allocation2 + $0xb0] sm:$0xff] %vm436_vm0, %v608_v20  ;;  %v611_v28 = vadd.f32 %v3333_v26, %v3832_v39  ;;  %v602_v29 = vpop.f32.mrb[23].mxu0  ;;  %1053 = vrot.lane.b32.xlu0 %v942_v23, %s3670_s16  ;;  %v3959_v31 = vld [vmem:[#allocation3 + $0x19] sm:$0xff] }
 0x115   : > { %v893_v32 = vld [vmem:[#allocation3 + $0x1f] sm:$0xff]  ;;  %v700_v35 = vld [vmem:[#allocation2 + $0x90] ss:$2 sm:$0xff]  ;;  %670 = vst.msk [vmem:[#allocation2 + $0xa0] sm:$0xff] %vm436_vm0, %v600_v25  ;;  %v603_v37 = vadd.f32 %v3832_v39, %v602_v29  ;;  %v980_v49 = vsel %vm3961_vm7, %v3959_v31, 0.0  ;;  %v1037_v11 = vsel %vm3899_vm3, %v3959_v31, 0.0 }
 0x116   : > { %772 = vst.msk [vmem:[#allocation3 + $0x28] sm:$0xff] %vm436_vm0, %v771_v24  ;;  %v732_v36 = vld [vmem:[#allocation2 + $0x91] ss:$2 sm:$0xff]  ;;  %v698_v41 = vld [vmem:[#allocation2 + $0x80] ss:$2 sm:$0xff]  ;;  %673 = vst.msk [vmem:[#allocation2 + $0xb8] sm:$0xff] %vm436_vm0, %v611_v28 }
 0x117   : > { %v754_v40 = vadd.f32 %v732_v36, %v700_v35  ;;  %v730_v43 = vld [vmem:[#allocation2 + $0x81] ss:$2 sm:$0xff]  ;;  %v1023_v42 = vsel %vm3866_vm1, %v893_v32, 0.0  ;;  %v925_v44 = vsel %vm3952_vm6, %v893_v32, 0.0  ;;  %671 = vst.msk [vmem:[#allocation2 + $0xa8] sm:$0xff] %vm436_vm0, %v603_v37  ;;  %v993_v13 = vsel %vm3909_vm4, %v893_v32, 0.0 }
 0x118   : > { %v753_v45 = vadd.f32 %v730_v43, %v698_v41  ;;  %v3980_v50 = vpack.c.bf16 %v925_v44, %v924_v10  ;;  %v3982_v51 = vpack.c.bf16 %v1023_v42, %v1022_v46  ;;  %v3996_v3 = vld [vmem:[#allocation3 + $0x20] sm:$0xff]  ;;  %v833_v37 = vand.u32 7, %v3999_v6 }
 0x119   : > { %v3336_v55 = vpop.f32.mrb[24].mxu0 }
 0x11a   : > { %v773_v53 = vadd.f32 %v754_v40, %v753_v45  ;;  %v624_v56 = vadd.f32 %v3336_v55, %v3832_v39  ;;  %v615_v57 = vpop.f32.mrb[25].mxu0  ;;  %v943_v55 = vpack.c.bf16 %v3996_v3, %v3919_v60  ;;  %vm4048_vm10 = vcmp.ge.s32.totalorder %v833_v37, 1 }
 0x11b   : > { %v616_v0 = vadd.f32 %v3832_v39, %v615_v57  ;;  %v3337_v1 = vpop.f32.mrb[26].mxu0  ;;  %vm4086_vm12 = vcmp.le.s32.totalorder %v833_v37, 6 }
 0x11c   : > { %v774_v58 = vmul.f32 0.25, %v773_v53  ;;  %676 = vst.msk [vmem:[#allocation2 + $0xd0] sm:$0xff] %vm436_vm0, %v624_v56  ;;  %v627_v8 = vadd.f32 %v3337_v1, %v3832_v39  ;;  %v618_v9 = vpop.f32.mrb[27].mxu0 }
 0x11d   : > { %v4006_v10 = vld [vmem:[#allocation3 + $0x21] sm:$0xff]  ;;  %v704_v15 = vld [vmem:[#allocation2 + $0xb0] ss:$2 sm:$0xff]  ;;  %v736_v17 = vld [vmem:[#allocation2 + $0xb1] ss:$2 sm:$0xff]  ;;  %674 = vst.msk [vmem:[#allocation2 + $0xc0] sm:$0xff] %vm436_vm0, %v616_v0  ;;  %v619_v18 = vadd.f32 %v3832_v39, %v618_v9 }
 0x11e   : > { %v4011_v12 = vld [vmem:[#allocation3 + $0x27] sm:$0xff]  ;;  %775 = vst.msk [vmem:[#allocation3 + $0x30] sm:$0xff] %vm436_vm0, %v774_v58  ;;  %v1038_v20 = vsel %vm3915_vm5, %v4006_v10, 0.0  ;;  %v756_v24 = vadd.f32 %v736_v17, %v704_v15  ;;  %677 = vst.msk [vmem:[#allocation2 + $0xd8] sm:$0xff] %vm436_vm0, %v627_v8  ;;  %v981_v40 = vsel %vm3992_vm9, %v4006_v10, 0.0  ;;  %v1011_v2 = vsel %vm3961_vm7, %v4006_v10, 0.0 }
 0x11f   : > { %v4015_v14 = vld [vmem:[#allocation3 + $0x28] sm:$0xff]  ;;  %v926_v21 = vsel %vm3987_vm8, %v4011_v12, 0.0  ;;  %v1045_v28 = vpack.c.bf16 %v1038_v20, %v1037_v11  ;;  %v994_v29 = vsel %vm3952_vm6, %v4011_v12, 0.0  ;;  %v1024_v32 = vsel %vm3909_vm4, %v4011_v12, 0.0  ;;  %675 = vst.msk [vmem:[#allocation2 + $0xc8] sm:$0xff] %vm436_vm0, %v619_v18 }
 0x120   : > { %v1005_v23 = vpack.c.bf16 %v4015_v14, %v3996_v3  ;;  %v702_v25 = vld [vmem:[#allocation2 + $0xa0] ss:$2 sm:$0xff]  ;;  %v734_v26 = vld [vmem:[#allocation2 + $0xa1] ss:$2 sm:$0xff]  ;;  %v1000_v36 = vpack.c.bf16 %v994_v29, %v993_v13  ;;  %v4041_v41 = vpack.c.bf16 %v981_v40, %v980_v49  ;;  %v840_v20 = vand.u32 7, %v792_v7 }
 0x121   : > { %v755_v35 = vadd.f32 %v734_v26, %v702_v25  ;;  %3350 = vmatprep.mubr.msk.bf16.mxu0 %vm436_vm0, %v1045_v28  ;;  %v3340_v42 = vpop.f32.mrb[28].mxu0  ;;  %v793_v26 = vadd.s32 56, %v3849_v62  ;;  %v890_v29 = vld [vmem:[#allocation3 + $0x7] sm:$0xff] }
 0x122   : > { %1067 = vrot.lane.b32.xlu1 %v1000_v36, %s3670_s16  ;;  %v640_v54 = vadd.f32 %v3340_v42, %v3832_v39  ;;  %v631_v44 = vpop.f32.mrb[29].mxu0  ;;  %vm4099_vm13 = vcmp.ge.s32.totalorder %v840_v20, 1  ;;  %vm4126_vm15 = vcmp.le.s32.totalorder %v840_v20, 6 }
 0x123   : > { %v776_v43 = vadd.f32 %v756_v24, %v755_v35  ;;  %v632_v46 = vadd.f32 %v3832_v39, %v631_v44  ;;  %v3341_v53 = vpop.f32.mrb[30].mxu0 }
 0x124   : > { %680 = vst.msk [vmem:[#allocation2 + $0xf0] sm:$0xff] %vm436_vm0, %v640_v54  ;;  %v643_v58 = vadd.f32 %v3341_v53, %v3832_v39  ;;  %v634_v0 = vpop.f32.mrb[31].mxu0 }
 0x125   : > { %v777_v45 = vmul.f32 0.25, %v776_v43  ;;  %v895_v49 = vld [vmem:[#allocation3 + $0x2f] sm:$0xff]  ;;  %678 = vst.msk [vmem:[#allocation2 + $0xe0] sm:$0xff] %vm436_vm0, %v632_v46  ;;  %v635_v12 = vadd.f32 %v3832_v39, %v634_v0  ;;  %v847_v0 = vand.u32 7, %v793_v26 }
 0x126   : > { %v4052_v57 = vld [vmem:[#allocation3 + $0x29] sm:$0xff]  ;;  %v740_v9 = vld [vmem:[#allocation2 + $0xd1] ss:$2 sm:$0xff]  ;;  %v1025_v11 = vsel %vm3952_vm6, %v895_v49, 0.0  ;;  %1055 = vrot.lane.b32.xlu1 %v943_v55, %s3670_s16  ;;  %681 = vst.msk [vmem:[#allocation2 + $0xf8] sm:$0xff] %vm436_vm0, %v643_v58  ;;  %v927_v39 = vsel %vm4048_vm10, %v895_v49, 0.0 }
 0x127   : > { %v4056_v1 = vld [vmem:[#allocation3 + $0x30] sm:$0xff]  ;;  %778 = vst.msk [vmem:[#allocation3 + $0x38] sm:$0xff] %vm436_vm0, %v777_v45  ;;  %v706_v13 = vld [vmem:[#allocation2 + $0xc0] ss:$2 sm:$0xff]  ;;  %v738_v15 = vld [vmem:[#allocation2 + $0xc1] ss:$2 sm:$0xff]  ;;  %v4074_v17 = vpack.c.bf16 %v1025_v11, %v1024_v32  ;;  %v4082_v24 = vpack.c.bf16 %v927_v39, %v926_v21 }
 0x128   : > { %v708_v8 = vld [vmem:[#allocation2 + $0xd0] ss:$2 sm:$0xff]  ;;  %v944_v19 = vpack.c.bf16 %v4056_v1, %v4015_v14  ;;  %v757_v18 = vadd.f32 %v738_v15, %v706_v13  ;;  %679 = vst.msk [vmem:[#allocation2 + $0xe8] sm:$0xff] %vm436_vm0, %v635_v12  ;;  %v982_v27 = vsel %vm4060_vm11, %v4052_v57, 0.0  ;;  %v1039_v35 = vsel %vm3961_vm7, %v4052_v57, 0.0  ;;  %v3430_v15 = vld [vmem:[%s4800_s3 + $0x80] sm:$0xff]  }
 0x129   : > { %v758_v38 = vadd.f32 %v740_v9, %v708_v8  ;;  %v995_v21 = vsel %vm3987_vm8, %v895_v49, 0.0  ;;  %vm4122_vm14 = vcmp.ge.s32.totalorder %v847_v0, 1  ;;  %vm4152_vm4 = vcmp.le.s32.totalorder %v847_v0, 6 }
 0x12a   : > { %1057 = vrot.lane.b32.xlu1 %v944_v19, %s3670_s16 }
 0x12b   : > { %v779_v25 = vadd.f32 %v758_v38, %v757_v18 }
 0x12d   : > { %v780_v28 = vmul.f32 0.25, %v779_v25  ;;  %v712_v42 = vld [vmem:[#allocation2 + $0xf0] ss:$2 sm:$0xff]  ;;  %v744_v54 = vld [vmem:[#allocation2 + $0xf1] ss:$2 sm:$0xff]  ;;  %v1012_v25 = vsel %vm3992_vm9, %v4052_v57, 0.0 }
 0x12e   : > { %v4090_v32 = vld [vmem:[#allocation3 + $0x31] sm:$0xff]  ;;  %v760_v53 = vadd.f32 %v744_v54, %v712_v42  ;;  %v1018_v57 = vpack.c.bf16 %v1012_v25, %v1011_v2 }
 0x12f   : > { %v896_v36 = vld [vmem:[#allocation3 + $0x37] sm:$0xff]  ;;  %781 = vst.msk [vmem:[#allocation3 + $0x40] sm:$0xff] %vm436_vm0, %v780_v28  ;;  %v1040_v37 = vsel %vm3992_vm9, %v4090_v32, 0.0  ;;  %v710_v55 = vld [vmem:[#allocation2 + $0xe0] ss:$2 sm:$0xff]  ;;  %v983_v8 = vsel %vm4086_vm12, %v4090_v32, 0.0 }
 0x130   : > { %v4097_v40 = vld [vmem:[#allocation3 + $0x38] sm:$0xff]  ;;  %v996_v44 = vsel %vm4048_vm10, %v896_v36, 0.0  ;;  %v1046_v46 = vpack.c.bf16 %v1040_v37, %v1039_v35  ;;  %v742_v49 = vld [vmem:[#allocation2 + $0xe1] ss:$2 sm:$0xff]  ;;  %v928_v9 = vsel %vm4099_vm13, %v896_v36, 0.0  ;;  %v1026_v11 = vsel %vm3987_vm8, %v896_v36, 0.0 }
 0x131   : > { %v1006_v45 = vpack.c.bf16 %v4097_v40, %v4056_v1  ;;  %v1001_v58 = vpack.c.bf16 %v996_v44, %v995_v21  ;;  %v759_v7 = vadd.f32 %v742_v49, %v710_v55  ;;  %v4120_v12 = vpack.c.bf16 %v983_v8, %v982_v27  ;;  %v1036_v37 = vld [vmem:[#allocation3 + $0x51] sm:$0xff]  ;;  %v3447_v1 = vld [vmem:[%s4802_s5 + $0x4] ss:$8 sps:$4 sm:$0xff]  }
 0x132   : > { %3351 = vmatmul.mubr.msk.bf16.vlgmr.msra.gmra.mrb[32].mxu0 %vm436_vm0, %v1046_v46  ;;  %v1034_v42 = vld [vmem:[#allocation3 + $0x50] sm:$0xff]  ;;  %v1044_v10 = vsel %vm4152_vm4, %v1036_v37, 0.0  ;;  %2660 = vmatprep.subr.bf16.mxu0 %v3447_v1  ;;  %v3526_v1 = vld [vmem:[%s4802_s5 + $0x2c0] ss:$8 sps:$4 sm:$0xff]  }
 0x133   : > { %1069 = vrot.lane.b32.xlu0 %v1001_v58, %s3670_s16  ;;  %v782_v19 = vadd.f32 %v760_v53, %v759_v7 }
 0x135   : > { %v783_v38 = vmul.f32 0.25, %v782_v19 }
 0x136   : > { %v4130_v18 = vld [vmem:[#allocation3 + $0x40] sm:$0xff] }
 0x137   : > { %v952_v63 = vld [vmem:[#allocation3 + $0x39] sm:$0xff]  ;;  %784 = vst.msk [vmem:[#allocation3 + $0x48] sm:$0xff] %vm436_vm0, %v783_v38  ;;  %v945_v27 = vpack.c.bf16 %v4130_v18, %v4097_v40 }
 0x138   : > { %v897_v39 = vld [vmem:[#allocation3 + $0x3f] sm:$0xff]  ;;  %v984_v26 = vsel %vm4126_vm15, %v952_v63, 0.0  ;;  %v1041_v44 = vsel %vm4060_vm11, %v952_v63, 0.0 }
 0x139   : > { %v929_v20 = vsel %vm4122_vm14, %v897_v39, 0.0  ;;  %v1027_v28 = vsel %vm4048_vm10, %v897_v39, 0.0  ;;  %1059 = vrot.lane.b32.xlu1 %v945_v27, %s3670_s16  ;;  %v997_v33 = vsel %vm4099_vm13, %v897_v39, 0.0  ;;  %v1010_v39 = vsel %vm3915_vm5, %v3959_v31, 0.0 }
 0x13a   : > { %v4145_v35 = vpack.c.bf16 %v929_v20, %v928_v9  ;;  %v4147_v36 = vpack.c.bf16 %v1027_v28, %v1026_v11  ;;  %v1009_v20 = vsel %vm3899_vm3, %v3921_v61, 0.0  ;;  %v1014_v28 = vsel %vm4086_vm12, %v952_v63, 0.0 }
 0x13b   : > { %v1017_v31 = vpack.c.bf16 %v1010_v39, %v1009_v20  ;;  %v922_v63 = vsel %vm3895_vm2, %v890_v29, 0.0  ;;  %v3457_v29 = vld [vmem:[%s4802_s5 + $0x30] ss:$8 sps:$4 sm:$0xff]  }
 0x13d   : > { %1079 = vrot.lane.b32.xlu1 %v1018_v57, %s3670_s16 }
 0x13e   : > { %v4157_v56 = vld [vmem:[#allocation3 + $0x48] sm:$0xff] }
 0x13f   : > { %v953_v54 = vld [vmem:[#allocation3 + $0x41] sm:$0xff]  ;;  %v1007_v53 = vpack.c.bf16 %v4157_v56, %v4130_v18  ;;  %v1035_v55 = vpack.c.bf16 %v1034_v42, %v4157_v56  ;;  %v1008_v0 = vld [vmem:[#allocation3 + $0x49] sm:$0xff]  ;;  %v3436_v42 = vld [vmem:[%s4800_s3 + $0x98] sm:$0xff]  }
 0x140   : > { %v990_v46 = vld [vmem:[#allocation3 + $0x47] sm:$0xff]  ;;  %v1042_v49 = vsel %vm4086_vm12, %v953_v54, 0.0  ;;  %v1021_v7 = vld [vmem:[#allocation3 + $0x4f] sm:$0xff]  ;;  %v1043_v19 = vsel %vm4126_vm15, %v1008_v0, 0.0  ;;  %v985_v27 = vsel %vm4152_vm4, %v953_v54, 0.0  ;;  %v1015_v2 = vsel %vm4126_vm15, %v953_v54, 0.0 }
 0x141   : > { %v998_v58 = vsel %vm4122_vm14, %v990_v46, 0.0  ;;  %v1047_v8 = vpack.c.bf16 %v1042_v49, %v1041_v44  ;;  %v1028_v11 = vsel %vm4099_vm13, %v990_v46, 0.0  ;;  %1086 = vrot.lane.b32.xlu1 %v1035_v55, %s3670_s16  ;;  %v1048_v38 = vpack.c.bf16 %v1044_v10, %v1043_v19  ;;  %v3437_v54 = vld [vmem:[%s4800_s3 + $0xe0] sm:$0xff]   ;;  %v3439_v55 = vld [vmem:[%s4800_s3 + $0xe8] sm:$0xff]   ;;  %v3448_v56 = vld [vmem:[%s4802_s5 + $0x10] ss:$8 sps:$4 sm:$0xff]  }
 0x142   : > { %v1002_v9 = vpack.c.bf16 %v998_v58, %v997_v33  ;;  %v4184_v25 = vpack.c.bf16 %v985_v27, %v984_v26  ;;  %v1029_v43 = vsel %vm4122_vm14, %v1021_v7, 0.0  ;;  %v1013_v26 = vsel %vm4060_vm11, %v4090_v32, 0.0  ;;  %v3438_v33 = vld [vmem:[%s4800_s3 + $0xa0] sm:$0xff]   ;;  %v3441_v58 = vld [vmem:[%s4800_s3 + $0xf0] sm:$0xff]  }
 0x143   : > { %3354 = vmatprep.mubr.msk.bf16.mxu0 %vm436_vm0, %v1047_v8  ;;  %v4192_v59 = vpack.c.bf16 %v1029_v43, %v1028_v11  ;;  %v1019_v13 = vpack.c.bf16 %v1014_v28, %v1013_v26  ;;  %v1016_v48 = vsel %vm4152_vm4, %v1008_v0, 0.0  ;;  %v930_v32 = vpack.c.bf16 %v923_v34, %v922_v63  ;;  %v3434_v34 = vld [vmem:[%s4800_s3 + $0x90] sm:$0xff]   ;;  %v3454_v26 = vld [vmem:[%s4802_s5 + $0x200] ss:$8 sps:$4 sm:$0xff]  }
 0x144   : > { %1071 = vrot.lane.b32.xlu0 %v1002_v9, %s3670_s16  ;;  %3355 = vmatmul.mubr.msk.bf16.gmra.mrb[36].mxu0 %vm436_vm0, %v1048_v38  ;;  %v1020_v61 = vpack.c.bf16 %v1016_v48, %v1015_v2  ;;  %v3442_v0 = vld [vmem:[%s4800_s3 + $0xb0] sm:$0xff]   ;;  %v3444_v9 = vld [vmem:[%s4800_s3 + $0xb8] sm:$0xff]  }
 0x145   : > { %v3459_v2 = vld [vmem:[%s4802_s5 + $0x34] ss:$8 sps:$4 sm:$0xff]   ;;  %v3460_v63 = vld [vmem:[%s4802_s5 + $0x210] ss:$8 sps:$4 sm:$0xff]  }
 0x146   : > { %v3462_v48 = vld [vmem:[%s4802_s5 + $0x214] ss:$8 sps:$4 sm:$0xff]  }
 0x148   : > { %1077 = vrot.lane.b32.xlu0 %v1017_v31, %s3670_s16 }
 0x14c   : > { %1081 = vrot.lane.b32.xlu0 %v1019_v13, %s3670_s16  ;;  %v3456_v13 = vld [vmem:[%s4802_s5 + $0x204] ss:$8 sps:$4 sm:$0xff]  }
 0x150   : > { %1083 = vrot.lane.b32.xlu0 %v1020_v61, %s3670_s16 }
 0x182   : > { %v1066_v57 = vpop.permute.xlu0 %1065 }
 0x183   : > { %v1106_v6 = vsel %vm436_vm0, %v3944_v16, %v1066_v57  ;;  %v3435_v16 = vld [vmem:[%s4800_s3 + $0xd8] sm:$0xff]  }
 0x184   : > { %1488 = vmatprep.mubr.bf16.mxu1 %v1106_v6 }
 0x186   : > { %v1054_v21 = vpop.permute.xlu0 %1053 }
 0x187   : > { %v1090_v37 = vsel %vm436_vm0, %v930_v32, %v1054_v21  ;;  %v3468_v21 = vld [vmem:[%s4802_s5 + $0x224] ss:$8 sps:$4 sm:$0xff]  }
 0x188   : > { %1489 = vmatmul.mubr.bf16.vlgmr.msra.gmra.mrb[0].mxu1 %v1090_v37  ;;  %v3466_v37 = vld [vmem:[%s4802_s5 + $0x220] ss:$8 sps:$4 sm:$0xff]  }
 0x189   : > { %3255 = vmatpush3.bf16.msra.mxu1 %v3430_v15  ;;  %v3465_v15 = vld [vmem:[%s4802_s5 + $0x44] ss:$8 sps:$4 sm:$0xff]  }
 0x18a   : > { %3256 = vmatprep.subr.bf16.mxu1 %v3431_v47  ;;  %v3463_v47 = vld [vmem:[%s4802_s5 + $0x40] ss:$8 sps:$4 sm:$0xff]  }
 0x18d   : > { %3257 = vmatpush3.bf16.msra.mxu1 %v3432_v22  ;;  %v3471_v22 = vld [vmem:[%s4802_s5 + $0x54] ss:$8 sps:$4 sm:$0xff]  }
 0x18e   : > { %3258 = vmatprep.subr.bf16.mxu1 %v3433_v30  ;;  %v3474_v30 = vld [vmem:[%s4802_s5 + $0x234] ss:$8 sps:$4 sm:$0xff]  }
 0x191   : > { %3259 = vmatpush3.bf16.msra.mxu1 %v3434_v34  ;;  %v3469_v34 = vld [vmem:[%s4802_s5 + $0x50] ss:$8 sps:$4 sm:$0xff]  }
 0x192   : > { %3260 = vmatprep.subr.bf16.mxu1 %v3435_v16  ;;  %v3472_v16 = vld [vmem:[%s4802_s5 + $0x230] ss:$8 sps:$4 sm:$0xff]  }
 0x194   : > { %v1068_v44 = vpop.permute.xlu1 %1067 }
 0x195   : > { %v1110_v46 = vsel %vm436_vm0, %v4041_v41, %v1068_v44  ;;  %3261 = vmatpush3.bf16.msra.mxu1 %v3436_v42  ;;  %v3440_v41 = vld [vmem:[%s4800_s3 + $0xa8] sm:$0xff]  }
 0x196   : > { %1496 = vmatprep.mubr.bf16.mxu1 %v1110_v46  ;;  %3262 = vmatprep.subr.bf16.mxu1 %v3437_v54  ;;  %v3477_v42 = vld [vmem:[%s4802_s5 + $0x64] ss:$8 sps:$4 sm:$0xff]   ;;  %v3475_v44 = vld [vmem:[%s4802_s5 + $0x60] ss:$8 sps:$4 sm:$0xff]  }
 0x197   : > { %v3480_v54 = vld [vmem:[%s4802_s5 + $0x244] ss:$8 sps:$4 sm:$0xff]   ;;  %v3478_v46 = vld [vmem:[%s4802_s5 + $0x240] ss:$8 sps:$4 sm:$0xff]  }
 0x198   : > { %v1056_v10 = vpop.permute.xlu1 %1055 }
 0x199   : > { %v1094_v49 = vsel %vm436_vm0, %v3980_v50, %v1056_v10  ;;  %3263 = vmatpush3.bf16.msra.mxu1 %v3438_v33  ;;  %v3443_v50 = vld [vmem:[%s4800_s3 + $0xf8] sm:$0xff]  }
 0x19a   : > { %1497 = vmatmul.mubr.bf16.gmra.mrb[4].mxu1 %v1094_v49  ;;  %3264 = vmatprep.subr.bf16.mxu1 %v3439_v55  ;;  %v3483_v33 = vld [vmem:[%s4802_s5 + $0x74] ss:$8 sps:$4 sm:$0xff]   ;;  %v3481_v55 = vld [vmem:[%s4802_s5 + $0x70] ss:$8 sps:$4 sm:$0xff]  }
 0x19b   : > { %v3484_v49 = vld [vmem:[%s4802_s5 + $0x250] ss:$8 sps:$4 sm:$0xff]  }
 0x19c   : > { %v1058_v7 = vpop.permute.xlu1 %1057 }
 0x19d   : > { %3265 = vmatpush3.bf16.msra.mxu1 %v3440_v41  ;;  %v1098_v19 = vsel %vm436_vm0, %v4082_v24, %v1058_v7  ;;  %v1140_v31 = vsel %vm436_vm0, %v4074_v17, %v1058_v7  ;;  %v3489_v41 = vld [vmem:[%s4802_s5 + $0x84] ss:$8 sps:$4 sm:$0xff]   ;;  %v3495_v7 = vld [vmem:[%s4802_s5 + $0x94] ss:$8 sps:$4 sm:$0xff]  }
 0x19e   : > { %3266 = vmatprep.subr.bf16.mxu1 %v3441_v58  ;;  %v3492_v58 = vld [vmem:[%s4802_s5 + $0x264] ss:$8 sps:$4 sm:$0xff]  }
 0x1a1   : > { %3267 = vmatpush3.bf16.msra.mxu1 %v3442_v0  ;;  %v3487_v0 = vld [vmem:[%s4802_s5 + $0x80] ss:$8 sps:$4 sm:$0xff]  }
 0x1a2   : > { %3268 = vmatprep.subr.bf16.mxu1 %v3443_v50  ;;  %v3490_v50 = vld [vmem:[%s4802_s5 + $0x260] ss:$8 sps:$4 sm:$0xff]  }
 0x1a5   : > { %v1070_v8 = vpop.permute.xlu0 %1069  ;;  %3269 = vmatpush3.bf16.msra.mxu1 %v3444_v9  ;;  %v3493_v9 = vld [vmem:[%s4802_s5 + $0x90] ss:$8 sps:$4 sm:$0xff]  }
 0x1a6   : > { %v1114_v11 = vsel %vm436_vm0, %v4120_v12, %v1070_v8  ;;  %v1137_v12 = vsel %vm436_vm0, %v3982_v51, %v1056_v10  ;;  %2746 = vmatprep.subr.bf16.mxu1 %v3456_v13  ;;  %v3486_v10 = vld [vmem:[%s4802_s5 + $0x254] ss:$8 sps:$4 sm:$0xff]   ;;  %v3538_v13 = vld [vmem:[%s4802_s5 + $0x2e0] ss:$8 sps:$4 sm:$0xff]  }
 0x1a7   : > { %1504 = vmatprep.mubr.bf16.mxu1 %v1114_v11  ;;  %v3498_v8 = vld [vmem:[%s4802_s5 + $0x274] ss:$8 sps:$4 sm:$0xff]   ;;  %v3496_v11 = vld [vmem:[%s4802_s5 + $0x270] ss:$8 sps:$4 sm:$0xff]  }
 0x1a8   : > { %1505 = vmatmul.mubr.bf16.gmra.mrb[8].mxu1 %v1098_v19  ;;  %v3501_v19 = vld [vmem:[%s4802_s5 + $0xa4] ss:$8 sps:$4 sm:$0xff]  }
 0x1ab   : > { %v1060_v38 = vpop.permute.xlu1 %1059 }
 0x1ac   : > { %v1102_v43 = vsel %vm436_vm0, %v4145_v35, %v1060_v38  ;;  %v1143_v51 = vsel %vm436_vm0, %v4147_v36, %v1060_v38  ;;  %v3450_v36 = vld [vmem:[%s4802_s5 + $0x14] ss:$8 sps:$4 sm:$0xff]   ;;  %v3504_v38 = vld [vmem:[%s4802_s5 + $0x284] ss:$8 sps:$4 sm:$0xff]  }
 0x1b6   : > { %v1072_v39 = vpop.permute.xlu0 %1071 }
 0x1b7   : > { %v1118_v27 = vsel %vm436_vm0, %v4184_v25, %v1072_v39  ;;  %v1080_v25 = vpop.permute.xlu1 %1079  ;;  %v3499_v39 = vld [vmem:[%s4802_s5 + $0xa0] ss:$8 sps:$4 sm:$0xff]  }
 0x1b8   : > { %1512 = vmatprep.mubr.bf16.mxu1 %v1118_v27  ;;  %v1126_v35 = vsel %vm436_vm0, %v1005_v23, %v1080_v25  ;;  %v3445_v23 = vld [vmem:[%s4802_s5] ss:$8 sps:$4 sm:$0xff]   ;;  %v3516_v25 = vld [vmem:[%s4802_s5 + $0x2a4] ss:$8 sps:$4 sm:$0xff]  }
 0x1b9   : > { %1513 = vmatmul.mubr.bf16.gmra.mrb[12].mxu1 %v1102_v43  ;;  %2661 = vmatpush1.bf16.msra.mxu0 %v3445_v23  ;;  %v3502_v27 = vld [vmem:[%s4802_s5 + $0x280] ss:$8 sps:$4 sm:$0xff]   ;;  %v3507_v43 = vld [vmem:[%s4802_s5 + $0xb4] ss:$8 sps:$4 sm:$0xff]  }
 0x1ba   : > { %1553 = vmatprep.mubr.bf16.mxu1 %v1137_v12  ;;  %v1078_v20 = vpop.permute.xlu0 %1077  ;;  %2662 = vmatprep.subr.bf16.mxu0 %v3450_v36  ;;  %v3510_v12 = vld [vmem:[%s4802_s5 + $0x294] ss:$8 sps:$4 sm:$0xff]   ;;  %v3523_v23 = vld [vmem:[%s4802_s5 + $0xe0] ss:$8 sps:$4 sm:$0xff]  }
 0x1bb   : > { %v1122_v24 = vsel %vm436_vm0, %v1004_v5, %v1078_v20  ;;  %v1087_v52 = vpop.permute.xlu1 %1086  ;;  %v3505_v20 = vld [vmem:[%s4802_s5 + $0xb0] ss:$8 sps:$4 sm:$0xff]   ;;  %v3531_v36 = vld [vmem:[%s4802_s5 + $0xf4] ss:$8 sps:$4 sm:$0xff]  }
 0x1bc   : > { %v1147_v5 = vsel %vm436_vm0, %v4192_v59, %v1087_v52  ;;  %v3453_v59 = vld [vmem:[%s4802_s5 + $0x24] ss:$8 sps:$4 sm:$0xff]   ;;  %v3522_v52 = vld [vmem:[%s4802_s5 + $0x2b4] ss:$8 sps:$4 sm:$0xff]  }
 0x1bd   : > { %2663 = vmatpush1.bf16.msra.mxu0 %v3448_v56  ;;  %v3534_v56 = vld [vmem:[%s4802_s5 + $0x2d4] ss:$8 sps:$4 sm:$0xff]  }
 0x1be   : > { %v1082_v28 = vpop.permute.xlu0 %1081  ;;  %2664 = vmatprep.subr.bf16.mxu0 %v3453_v59  ;;  %v3532_v59 = vld [vmem:[%s4802_s5 + $0x2d0] ss:$8 sps:$4 sm:$0xff]  }
 0x1bf   : > { %v1130_v60 = vsel %vm436_vm0, %v1006_v45, %v1082_v28  ;;  %v3519_v28 = vld [vmem:[%s4802_s5 + $0xd4] ss:$8 sps:$4 sm:$0xff]  }
 0x1c1   : > { %1554 = vmatmul.mubr.bf16.vlgmr.msra.gmra.mrb[16].mxu1 %v1122_v24  ;;  %v3508_v24 = vld [vmem:[%s4802_s5 + $0x290] ss:$8 sps:$4 sm:$0xff]  }
 0x1c2   : > { %1561 = vmatprep.mubr.bf16.mxu1 %v1140_v31  ;;  %v1084_v3 = vpop.permute.xlu0 %1083  ;;  %2747 = vmatpush1.bf16.msra.mxu1 %v3454_v26  ;;  %v3513_v31 = vld [vmem:[%s4802_s5 + $0xc4] ss:$8 sps:$4 sm:$0xff]  }
 0x1c3   : > { %v1134_v14 = vsel %vm436_vm0, %v1007_v53, %v1084_v3  ;;  %v3451_v53 = vld [vmem:[%s4802_s5 + $0x20] ss:$8 sps:$4 sm:$0xff]   ;;  %2748 = vmatprep.subr.bf16.mxu1 %v3462_v48  ;;  %v3525_v3 = vld [vmem:[%s4802_s5 + $0xe4] ss:$8 sps:$4 sm:$0xff]   ;;  %v3546_v48 = vld [vmem:[%s4802_s5 + $0x2f4] ss:$8 sps:$4 sm:$0xff]  }
 0x1c4   : > { %2665 = vmatpush1.bf16.msra.mxu0 %v3451_v53  ;;  %v3529_v53 = vld [vmem:[%s4802_s5 + $0xf0] ss:$8 sps:$4 sm:$0xff]   ;;  %v3537_v26 = vld [vmem:[%s4802_s5 + $0x104] ss:$8 sps:$4 sm:$0xff]  }
 0x1c5   : > { %2666 = vmatprep.subr.bf16.mxu0 %v3459_v2  ;;  %v3540_v2 = vld [vmem:[%s4802_s5 + $0x2e4] ss:$8 sps:$4 sm:$0xff]  }
 0x1c6   : > { %2749 = vmatpush1.bf16.msra.mxu1 %v3460_v63  ;;  %v3552_v63 = vld [vmem:[%s4802_s5 + $0x304] ss:$8 sps:$4 sm:$0xff]  }
 0x1c7   : > { %2750 = vmatprep.subr.bf16.mxu1 %v3468_v21 }
 0x1c8   : > { %2667 = vmatpush1.bf16.msra.mxu0 %v3457_v29  ;;  %v3544_v29 = vld [vmem:[%s4802_s5 + $0x2f0] ss:$8 sps:$4 sm:$0xff]  }
 0x1c9   : > { %1562 = vmatmul.mubr.bf16.gmra.mrb[20].mxu1 %v1126_v35  ;;  %2668 = vmatprep.subr.bf16.mxu0 %v3465_v15  ;;  %v3511_v35 = vld [vmem:[%s4802_s5 + $0xc0] ss:$8 sps:$4 sm:$0xff]  }
 0x1ca   : > { %1569 = vmatprep.mubr.bf16.mxu1 %v1143_v51  ;;  %2751 = vmatpush1.bf16.msra.mxu1 %v3466_v37  ;;  %v3514_v51 = vld [vmem:[%s4802_s5 + $0x2a0] ss:$8 sps:$4 sm:$0xff]  }
 0x1cb   : > { %2752 = vmatprep.subr.bf16.mxu1 %v3474_v30 }
 0x1cc   : > { %2669 = vmatpush1.bf16.msra.mxu0 %v3463_v47 }
 0x1cd   : > { %2670 = vmatprep.subr.bf16.mxu0 %v3471_v22 }
 0x1ce   : > { %2753 = vmatpush1.bf16.msra.mxu1 %v3472_v16 }
 0x1cf   : > { %2754 = vmatprep.subr.bf16.mxu1 %v3480_v54 }
 0x1d0   : > { %2671 = vmatpush1.bf16.msra.mxu0 %v3469_v34 }
 0x1d1   : > { %1570 = vmatmul.mubr.bf16.gmra.mrb[24].mxu1 %v1130_v60  ;;  %2672 = vmatprep.subr.bf16.mxu0 %v3477_v42  ;;  %v3517_v60 = vld [vmem:[%s4802_s5 + $0xd0] ss:$8 sps:$4 sm:$0xff]  }
 0x1d2   : > { %1577 = vmatprep.mubr.bf16.mxu1 %v1147_v5  ;;  %2755 = vmatpush1.bf16.msra.mxu1 %v3478_v46  ;;  %v3520_v5 = vld [vmem:[%s4802_s5 + $0x2b0] ss:$8 sps:$4 sm:$0xff]  }
 0x1d3   : > { %2756 = vmatprep.subr.bf16.mxu1 %v3486_v10 }
 0x1d4   : > { %2673 = vmatpush1.bf16.msra.mxu0 %v3475_v44 }
 0x1d5   : > { %2674 = vmatprep.subr.bf16.mxu0 %v3483_v33 }
 0x1d6   : > { %2757 = vmatpush1.bf16.msra.mxu1 %v3484_v49 }
 0x1d7   : > { %2758 = vmatprep.subr.bf16.mxu1 %v3492_v58 }
 0x1d8   : > { %2675 = vmatpush1.bf16.msra.mxu0 %v3481_v55 }
 0x1d9   : > { %1578 = vmatmul.mubr.bf16.gmra.mrb[28].mxu1 %v1134_v14  ;;  %2676 = vmatprep.subr.bf16.mxu0 %v3489_v41  ;;  %v3528_v14 = vld [vmem:[%s4802_s5 + $0x2c4] ss:$8 sps:$4 sm:$0xff]  }
 0x1da   : > { %2759 = vmatpush1.bf16.msra.mxu1 %v3490_v50 }
 0x1db   : > { %2760 = vmatprep.subr.bf16.mxu1 %v3498_v8 }
 0x1dc   : > { %2677 = vmatpush1.bf16.msra.mxu0 %v3487_v0 }
 0x1dd   : > { %2678 = vmatprep.subr.bf16.mxu0 %v3495_v7 }
 0x1de   : > { %2761 = vmatpush1.bf16.msra.mxu1 %v3496_v11 }
 0x1df   : > { %2762 = vmatprep.subr.bf16.mxu1 %v3504_v38 }
 0x1e0   : > { %2679 = vmatpush1.bf16.msra.mxu0 %v3493_v9 }
 0x1e1   : > { %2680 = vmatprep.subr.bf16.mxu0 %v3501_v19  ;;  %v2988_v19 = vld [vmem:[%s4801_s4] ss:$0 sm:$0xff] }
 0x1e2   : > { %2763 = vmatpush1.bf16.msra.mxu1 %v3502_v27 }
 0x1e3   : > { %2764 = vmatprep.subr.bf16.mxu1 %v3510_v12 }
 0x1e4   : > { %2681 = vmatpush1.bf16.msra.mxu0 %v3499_v39 }
 0x1e5   : > { %2682 = vmatprep.subr.bf16.mxu0 %v3507_v43 }
 0x1e6   : > { %2765 = vmatpush1.bf16.msra.mxu1 %v3508_v24 }
 0x1e7   : > { %2766 = vmatprep.subr.bf16.mxu1 %v3516_v25 }
 0x1e8   : > { %2683 = vmatpush1.bf16.msra.mxu0 %v3505_v20 }
 0x1e9   : > { %2684 = vmatprep.subr.bf16.mxu0 %v3513_v31 }
 0x1ea   : > { %2767 = vmatpush1.bf16.msra.mxu1 %v3514_v51 }
 0x1eb   : > { %2768 = vmatprep.subr.bf16.mxu1 %v3522_v52 }
 0x1ec   : > { %2685 = vmatpush1.bf16.msra.mxu0 %v3511_v35 }
 0x1ed   : > { %2686 = vmatprep.subr.bf16.mxu0 %v3519_v28 }
 0x1ee   : > { %2769 = vmatpush1.bf16.msra.mxu1 %v3520_v5 }
 0x1ef   : > { %2770 = vmatprep.subr.bf16.mxu1 %v3528_v14 }
 0x1f0   : > { %2687 = vmatpush1.bf16.msra.mxu0 %v3517_v60 }
 0x1f1   : > { %2688 = vmatprep.subr.bf16.mxu0 %v3525_v3 }
 0x1f2   : > { %2771 = vmatpush1.bf16.msra.mxu1 %v3526_v1 }
 0x1f3   : > { %2772 = vmatprep.subr.bf16.mxu1 %v3534_v56 }
 0x1f4   : > { %2689 = vmatpush1.bf16.msra.mxu0 %v3523_v23 }
 0x1f5   : > { %2690 = vmatprep.subr.bf16.mxu0 %v3531_v36 }
 0x1f6   : > { %2773 = vmatpush1.bf16.msra.mxu1 %v3532_v59 }
 0x1f7   : > { %2774 = vmatprep.subr.bf16.mxu1 %v3540_v2 }
 0x1f8   : > { %2691 = vmatpush1.bf16.msra.mxu0 %v3529_v53 }
 0x1f9   : > { %2703 = vmatprep.subr.bf16.mxu0 %v3537_v26 }
 0x1fa   : > { %2775 = vmatpush1.bf16.msra.mxu1 %v3538_v13 }
 0x1fb   : > { %2776 = vmatprep.subr.bf16.mxu1 %v3546_v48 }
 0x1fe   : > { %2777 = vmatpush1.bf16.msra.mxu1 %v3544_v29 }
 0x1ff   : > { %2789 = vmatprep.subr.bf16.mxu1 %v3552_v63 }
 0x205   : > { %v4302_v17 = vpop.f32.mrb[32].mxu0 }
 0x206   : > { %v4304_v40 = vpop.f32.mrb[33].mxu0 }
 0x207   : > { %v4306_v45 = vpop.f32.mrb[34].mxu0 }
 0x208   : > { %v4308_v18 = vpop.f32.mrb[35].mxu0 }
 0x217   : > { %v4334_v61 = vpop.f32.mrb[36].mxu0 }
 0x218   : > { %v4342_v57 = vpop.f32.mrb[37].mxu0 }
 0x219   : > { %v4344_v6 = vpop.f32.mrb[38].mxu0 }
 0x21a   : > { %v4346_v32 = vpop.f32.mrb[39].mxu0 }
 0x25b   : > { %v3230_v15 = vpop.f32.mrb[0].mxu1 }
 0x25c   : > { %v3231_v21 = vpop.f32.mrb[1].mxu1 }
 0x25d   : > { %v3232_v47 = vadd.f32 %v3231_v21, %v3230_v15  ;;  %v3233_v37 = vpop.f32.mrb[2].mxu1 }
 0x25e   : > { %v3234_v22 = vpop.f32.mrb[3].mxu1 }
 0x25f   : > { %v3235_v30 = vadd.f32 %v3234_v22, %v3233_v37  ;;  %v1491_v27 = vadd.f32 %v3232_v47, %v2988_v19 }
 0x261   : > { %v1494_v24 = vadd.f32 %v3235_v30, %v2988_v19 }
 0x26d   : > { %v3236_v34 = vpop.f32.mrb[4].mxu1 }
 0x26e   : > { %v3237_v16 = vpop.f32.mrb[5].mxu1 }
 0x26f   : > { %v3238_v42 = vadd.f32 %v3237_v16, %v3236_v34  ;;  %v3239_v54 = vpop.f32.mrb[6].mxu1 }
 0x270   : > { %v3240_v44 = vpop.f32.mrb[7].mxu1 }
 0x271   : > { %v3241_v46 = vadd.f32 %v3240_v44, %v3239_v54  ;;  %v1499_v3 = vadd.f32 %v3238_v42, %v2988_v19 }
 0x273   : > { %v1502_v56 = vadd.f32 %v3241_v46, %v2988_v19 }
 0x27b   : > { %v3242_v33 = vpop.f32.mrb[8].mxu1 }
 0x27c   : > { %v3243_v10 = vpop.f32.mrb[9].mxu1 }
 0x27d   : > { %v3244_v55 = vadd.f32 %v3243_v10, %v3242_v33  ;;  %v3245_v49 = vpop.f32.mrb[10].mxu1 }
 0x27e   : > { %v3246_v41 = vpop.f32.mrb[11].mxu1 }
 0x27f   : > { %v3247_v58 = vadd.f32 %v3246_v41, %v3245_v49  ;;  %v1507_v29 = vadd.f32 %v3244_v55, %v2988_v19 }
 0x281   : > { %v1510_v30 = vadd.f32 %v3247_v58, %v2988_v19 }
 0x28c   : > { %v3248_v0 = vpop.f32.mrb[12].mxu1 }
 0x28d   : > { %v3249_v50 = vpop.f32.mrb[13].mxu1 }
 0x28e   : > { %v3250_v7 = vadd.f32 %v3249_v50, %v3248_v0  ;;  %v3251_v8 = vpop.f32.mrb[14].mxu1 }
 0x28f   : > { %v3252_v9 = vpop.f32.mrb[15].mxu1 }
 0x290   : > { %v4510_v11 = vadd.f32 %v3252_v9, %v3251_v8  ;;  %v1515_v49 = vadd.f32 %v3250_v7, %v2988_v19 }
 0x294   : > { %v3270_v38 = vpop.f32.mrb[16].mxu1 }
 0x295   : > { %v3271_v39 = vpop.f32.mrb[17].mxu1 }
 0x296   : > { %v3272_v43 = vadd.f32 %v3271_v39, %v3270_v38  ;;  %v3273_v12 = vpop.f32.mrb[18].mxu1  ;;  %v1518_v39 = vadd.f32 %v4510_v11, %v2988_v19 }
 0x297   : > { %v3274_v20 = vpop.f32.mrb[19].mxu1 }
 0x298   : > { %v1556_v31 = vadd.f32 %v3272_v43, %v1491_v27  ;;  %v3275_v25 = vadd.f32 %v3274_v20, %v3273_v12 }
 0x29a   : > { %v1621_v35 = vadd.f32 %v4304_v40, %v1556_v31  ;;  %v1559_v51 = vadd.f32 %v3275_v25, %v1494_v24 }
 0x29c   : > { %v1651_v28 = vmax.f32 %v1621_v35, 0.0  ;;  %v1624_v52 = vadd.f32 %v4308_v18, %v1559_v51  ;;  %v3276_v60 = vpop.f32.mrb[20].mxu1 }
 0x29d   : > { %v3277_v5 = vpop.f32.mrb[21].mxu1 }
 0x29e   : > { %1661 = vst [vmem:[#allocation4] sm:$0xff] %v1651_v28  ;;  %v1652_v14 = vmax.f32 %v1624_v52, 0.0  ;;  %v3278_v23 = vadd.f32 %v3277_v5, %v3276_v60  ;;  %v3279_v1 = vpop.f32.mrb[22].mxu1 }
 0x29f   : > { %v3280_v36 = vpop.f32.mrb[23].mxu1 }
 0x2a0   : > { %1662 = vst [vmem:[#allocation4 + $0x8] sm:$0xff] %v1652_v14  ;;  %v1564_v53 = vadd.f32 %v3278_v23, %v1499_v3  ;;  %v3281_v59 = vadd.f32 %v3280_v36, %v3279_v1  ;;  %v1723_v14 = vand.u32 3, %v3854_v4 }
 0x2a2   : > { %v1629_v26 = vadd.f32 %v4302_v17, %v1564_v53  ;;  %v1567_v13 = vadd.f32 %v3281_v59, %v1502_v56  ;;  %vm1739_vm1 = vcmp.ge.s32.totalorder %v1723_v14, 1  ;;  %vm1753_vm5 = vcmp.le.s32.totalorder %v1723_v14, 2  ;;  %v3606_v14 = vld [vmem:[%s4802_s5 + $0x394] ss:$8 sps:$4 sm:$0xff]  }
 0x2a4   : > { %v1653_v40 = vmax.f32 %v1629_v26, 0.0  ;;  %v1632_v2 = vadd.f32 %v4306_v45, %v1567_v13  ;;  %v3282_v48 = vpop.f32.mrb[24].mxu1 }
 0x2a5   : > { %v3283_v18 = vpop.f32.mrb[25].mxu1 }
 0x2a6   : > { %1663 = vst [vmem:[#allocation4 + $0x10] sm:$0xff] %v1653_v40  ;;  %v1654_v63 = vmax.f32 %v1632_v2, 0.0  ;;  %v3284_v15 = vadd.f32 %v3283_v18, %v3282_v48  ;;  %v3285_v21 = vpop.f32.mrb[26].mxu1  ;;  %v3535_v40 = vld [vmem:[%s4802_s5 + $0x100] ss:$8 sps:$4 sm:$0xff]  }
 0x2a7   : > { %v1669_v47 = vld [vmem:[#allocation4] ss:$2 sm:$0xff]  ;;  %v1677_v37 = vld [vmem:[#allocation4 + $0x1] ss:$2 sm:$0xff]  ;;  %v3286_v22 = vpop.f32.mrb[27].mxu1 }
 0x2a8   : > { %v1684_v34 = vadd.f32 %v1677_v37, %v1669_v47  ;;  %1664 = vst [vmem:[#allocation4 + $0x18] sm:$0xff] %v1654_v63  ;;  %v1572_v16 = vadd.f32 %v3284_v15, %v1507_v29  ;;  %v3287_v42 = vadd.f32 %v3286_v22, %v3285_v21  ;;  %v3543_v48 = vld [vmem:[%s4802_s5 + $0x114] ss:$8 sps:$4 sm:$0xff]   ;;  %v3541_v18 = vld [vmem:[%s4802_s5 + $0x110] ss:$8 sps:$4 sm:$0xff]  }
 0x2a9   : > { %v3549_v29 = vld [vmem:[%s4802_s5 + $0x124] ss:$8 sps:$4 sm:$0xff]   ;;  %v3648_v2 = vld [vmem:[%s4802_s5 + $0x434] ss:$8 sps:$4 sm:$0xff]  }
 0x2aa   : > { %v1637_v17 = vadd.f32 %v4342_v57, %v1572_v16  ;;  %v1575_v54 = vadd.f32 %v3287_v42, %v1510_v30  ;;  %v1689_v44 = vrot.slane %v1684_v34, 4 }
 0x2ac   : > { %v1655_v45 = vmax.f32 %v1637_v17, 0.0  ;;  %v1640_v46 = vadd.f32 %v4346_v32, %v1575_v54  ;;  %v3288_v33 = vpop.f32.mrb[28].mxu1  ;;  %v1691_v10 = vadd.f32 %v1689_v44, %v1684_v34  ;;  %v3547_v34 = vld [vmem:[%s4802_s5 + $0x120] ss:$8 sps:$4 sm:$0xff]  }
 0x2ad   : > { %v3289_v55 = vpop.f32.mrb[29].mxu1  ;;  %v3550_v17 = vld [vmem:[%s4802_s5 + $0x300] ss:$8 sps:$4 sm:$0xff]  }
 0x2ae   : > { %1665 = vst [vmem:[#allocation4 + $0x20] sm:$0xff] %v1655_v45  ;;  %v1656_v41 = vmax.f32 %v1640_v46, 0.0  ;;  %v3290_v0 = vadd.f32 %v3289_v55, %v3288_v33  ;;  %v3291_v50 = vpop.f32.mrb[30].mxu1  ;;  %v1692_v58 = vmul.f32 0.25, %v1691_v10  ;;  %v3555_v45 = vld [vmem:[%s4802_s5 + $0x134] ss:$8 sps:$4 sm:$0xff]  }
 0x2af   : > { %v1671_v8 = vld [vmem:[#allocation4 + $0x10] ss:$2 sm:$0xff]  ;;  %v1679_v9 = vld [vmem:[#allocation4 + $0x11] ss:$2 sm:$0xff]  ;;  %v3292_v38 = vpop.f32.mrb[31].mxu1 }
 0x2b0   : > { %v1685_v57 = vadd.f32 %v1679_v9, %v1671_v8  ;;  %1666 = vst [vmem:[#allocation4 + $0x28] sm:$0xff] %v1656_v41  ;;  %v1580_v27 = vadd.f32 %v3290_v0, %v1515_v49  ;;  %v3293_v43 = vadd.f32 %v3292_v38, %v3291_v50  ;;  %1693 = vst [vmem:[#allocation5 + $0x8] sm:$0xf] %v1692_v58  ;;  %v3558_v46 = vld [vmem:[%s4802_s5 + $0x314] ss:$8 sps:$4 sm:$0xff]  }
 0x2b1   : > { %v3553_v10 = vld [vmem:[%s4802_s5 + $0x130] ss:$8 sps:$4 sm:$0xff]   ;;  %v3561_v49 = vld [vmem:[%s4802_s5 + $0x144] ss:$8 sps:$4 sm:$0xff]   ;;  %v3559_v0 = vld [vmem:[%s4802_s5 + $0x140] ss:$8 sps:$4 sm:$0xff]  }
 0x2b2   : > { %v1645_v32 = vadd.f32 %v4334_v61, %v1580_v27  ;;  %v1583_v12 = vadd.f32 %v3293_v43, %v1518_v39  ;;  %v1695_v20 = vrot.slane %v1685_v57, 4  ;;  %v3556_v55 = vld [vmem:[%s4802_s5 + $0x310] ss:$8 sps:$4 sm:$0xff]   ;;  %v3564_v41 = vld [vmem:[%s4802_s5 + $0x324] ss:$8 sps:$4 sm:$0xff]  }
 0x2b3   : > { %v3562_v50 = vld [vmem:[%s4802_s5 + $0x320] ss:$8 sps:$4 sm:$0xff]   ;;  %v3567_v58 = vld [vmem:[%s4802_s5 + $0x154] ss:$8 sps:$4 sm:$0xff]   ;;  %v3565_v9 = vld [vmem:[%s4802_s5 + $0x150] ss:$8 sps:$4 sm:$0xff]  }
 0x2b4   : > { %v1657_v7 = vmax.f32 %v1645_v32, 0.0  ;;  %v1648_v24 = vadd.f32 %v4344_v6, %v1583_v12  ;;  %v1697_v31 = vadd.f32 %v1695_v20, %v1685_v57  ;;  %v1716_v6 = vand.u32 3, %v3849_v62  ;;  %v3570_v8 = vld [vmem:[%s4802_s5 + $0x334] ss:$8 sps:$4 sm:$0xff]   ;;  %v3568_v38 = vld [vmem:[%s4802_s5 + $0x330] ss:$8 sps:$4 sm:$0xff]  }
 0x2b5   : > { %v3573_v39 = vld [vmem:[%s4802_s5 + $0x164] ss:$8 sps:$4 sm:$0xff]   ;;  %v3571_v27 = vld [vmem:[%s4802_s5 + $0x160] ss:$8 sps:$4 sm:$0xff]   ;;  %v3579_v32 = vld [vmem:[%s4802_s5 + $0x174] ss:$8 sps:$4 sm:$0xff]  }
 0x2b6   : > { %1667 = vst [vmem:[#allocation4 + $0x30] sm:$0xff] %v1657_v7  ;;  %v1658_v25 = vmax.f32 %v1648_v24, 0.0  ;;  %v1698_v35 = vmul.f32 0.25, %v1697_v31  ;;  %vm1738_vm0 = vcmp.ge.s32.totalorder %v1716_v6, 1  ;;  %vm1752_vm3 = vcmp.le.s32.totalorder %v1716_v6, 2 }
 0x2b7   : > { %v1673_v51 = vld [vmem:[#allocation4 + $0x20] ss:$2 sm:$0xff]  ;;  %v1681_v28 = vld [vmem:[#allocation4 + $0x21] ss:$2 sm:$0xff]  ;;  %vm4531_vm2 = vmpackc.low %vm1739_vm1, %vm1738_vm0 }
 0x2b8   : > { %v1686_v52 = vadd.f32 %v1681_v28, %v1673_v51  ;;  %1668 = vst [vmem:[#allocation4 + $0x38] sm:$0xff] %v1658_v25  ;;  %1699 = vst [vmem:[#allocation5 + $0xc] sm:$0xf] %v1698_v35  ;;  %v1747_v36 = vld [vmem:[#allocation5 + $0x4] sm:$0xff]  ;;  %v3582_v12 = vld [vmem:[%s4802_s5 + $0x354] ss:$8 sps:$4 sm:$0xff]  }
 0x2b9   : > { %v1736_v59 = vld [vmem:[#allocation5 + $0x3] sm:$0xff]  ;;  %vm4547_vm6 = vmpackc.low %vm1753_vm5, %vm1752_vm3  ;;  %v3577_v20 = vld [vmem:[%s4802_s5 + $0x170] ss:$8 sps:$4 sm:$0xff]  }
 0x2ba   : > { %v1701_v11 = vrot.slane %v1686_v52, 4  ;;  %v3576_v57 = vld [vmem:[%s4802_s5 + $0x344] ss:$8 sps:$4 sm:$0xff]   ;;  %v3574_v43 = vld [vmem:[%s4802_s5 + $0x340] ss:$8 sps:$4 sm:$0xff]  }
 0x2bb   : > { %v3580_v7 = vld [vmem:[%s4802_s5 + $0x350] ss:$8 sps:$4 sm:$0xff]   ;;  %v3585_v24 = vld [vmem:[%s4802_s5 + $0x184] ss:$8 sps:$4 sm:$0xff]   ;;  %v3583_v25 = vld [vmem:[%s4802_s5 + $0x180] ss:$8 sps:$4 sm:$0xff]  }
 0x2bc   : > { %v1703_v19 = vadd.f32 %v1701_v11, %v1686_v52  ;;  %v3588_v31 = vld [vmem:[%s4802_s5 + $0x364] ss:$8 sps:$4 sm:$0xff]   ;;  %v3586_v35 = vld [vmem:[%s4802_s5 + $0x360] ss:$8 sps:$4 sm:$0xff]   ;;  %v3591_v51 = vld [vmem:[%s4802_s5 + $0x194] ss:$8 sps:$4 sm:$0xff]  }
 0x2bd   : > { %v3594_v28 = vld [vmem:[%s4802_s5 + $0x374] ss:$8 sps:$4 sm:$0xff]   ;;  %v3589_v52 = vld [vmem:[%s4802_s5 + $0x190] ss:$8 sps:$4 sm:$0xff]  }
 0x2be   : > { %v1704_v60 = vmul.f32 0.25, %v1703_v19  ;;  %v3592_v11 = vld [vmem:[%s4802_s5 + $0x370] ss:$8 sps:$4 sm:$0xff]   ;;  %v3597_v19 = vld [vmem:[%s4802_s5 + $0x1a4] ss:$8 sps:$4 sm:$0xff]  }
 0x2bf   : > { %v1675_v5 = vld [vmem:[#allocation4 + $0x30] ss:$2 sm:$0xff]  ;;  %v1683_v3 = vld [vmem:[#allocation4 + $0x31] ss:$2 sm:$0xff]  ;;  %v1761_v15 = vld [vmem:[#allocation5 + $0x7] sm:$0xff] }
 0x2c0   : > { %v1687_v61 = vadd.f32 %v1683_v3, %v1675_v5  ;;  %1705 = vst [vmem:[#allocation5 + $0x10] sm:$0xf] %v1704_v60  ;;  %v1766_v47 = vld [vmem:[#allocation5 + $0x8] sm:$0xff]  ;;  %v3601_v6 = vld [vmem:[%s4802_s5 + $0x1b0] ss:$8 sps:$4 sm:$0xff]  }
 0x2c1   : > { %v3600_v60 = vld [vmem:[%s4802_s5 + $0x384] ss:$8 sps:$4 sm:$0xff]   ;;  %v3595_v5 = vld [vmem:[%s4802_s5 + $0x1a0] ss:$8 sps:$4 sm:$0xff]  }
 0x2c2   : > { %v1707_v23 = vrot.slane %v1687_v61, 4  ;;  %v3598_v3 = vld [vmem:[%s4802_s5 + $0x380] ss:$8 sps:$4 sm:$0xff]  }
 0x2c4   : > { %v1709_v1 = vadd.f32 %v1707_v23, %v1687_v61  ;;  %v3603_v61 = vld [vmem:[%s4802_s5 + $0x1b4] ss:$8 sps:$4 sm:$0xff]   ;;  %v3604_v23 = vld [vmem:[%s4802_s5 + $0x390] ss:$8 sps:$4 sm:$0xff]  }
 0x2c6   : > { %v1710_v56 = vmul.f32 0.25, %v1709_v1  ;;  %v3609_v1 = vld [vmem:[%s4802_s5 + $0x1c4] ss:$8 sps:$4 sm:$0xff]  }
 0x2c7   : > { %v1748_v53 = vld [vmem:[#allocation5 + $0xc] sm:$0xff] }
 0x2c8   : > { %v4526_v26 = vld [vmem:[#allocation5 + $0xb] sm:$0xff]  ;;  %v1749_v13 = vpack.c.bf16 %v1748_v53, %v1747_v36  ;;  %1711 = vst [vmem:[#allocation5 + $0x14] sm:$0xf] %v1710_v56 }
 0x2c9   : > { %v3174_v4 = vpack.c.bf16 %v4526_v26, %v1736_v59  ;;  %v1769_v21 = vld [vmem:[#allocation5 + $0x9] sm:$0xff]  ;;  %v3615_v59 = vld [vmem:[%s4802_s5 + $0x1d4] ss:$8 sps:$4 sm:$0xff]  }
 0x2ca   : > { %2692 = vmatprep.mubr.bf16.mxu0 %v1749_v13  ;;  %v3612_v36 = vld [vmem:[%s4802_s5 + $0x3a4] ss:$8 sps:$4 sm:$0xff]   ;;  %v3607_v56 = vld [vmem:[%s4802_s5 + $0x1c0] ss:$8 sps:$4 sm:$0xff]   ;;  %v3618_v13 = vld [vmem:[%s4802_s5 + $0x3b4] ss:$8 sps:$4 sm:$0xff]  }
 0x2cb   : > { %3175 = vmatmul.mubr.msk.bf16.vlgmr.msra.gmra.mrb[40].mxu0 %vm4531_vm2, %v3174_v4  ;;  %v3616_v4 = vld [vmem:[%s4802_s5 + $0x3b0] ss:$8 sps:$4 sm:$0xff]  }
 0x2cc   : > { %2704 = vmatpush1.bf16.msra.mxu0 %v3535_v40  ;;  %v3613_v40 = vld [vmem:[%s4802_s5 + $0x1d0] ss:$8 sps:$4 sm:$0xff]  }
 0x2cd   : > { %2705 = vmatprep.subr.bf16.mxu0 %v3543_v48  ;;  %v3621_v48 = vld [vmem:[%s4802_s5 + $0x1e4] ss:$8 sps:$4 sm:$0xff]  }
 0x2cf   : > { %v1762_v37 = vld [vmem:[#allocation5 + $0xf] sm:$0xff] }
 0x2d0   : > { %v1770_v22 = vld [vmem:[#allocation5 + $0x11] sm:$0xff]  ;;  %2706 = vmatpush1.bf16.msra.mxu0 %v3541_v18  ;;  %v3177_v16 = vpack.c.bf16 %v1762_v37, %v1761_v15  ;;  %v3624_v18 = vld [vmem:[%s4802_s5 + $0x3c4] ss:$8 sps:$4 sm:$0xff]   ;;  %v3622_v15 = vld [vmem:[%s4802_s5 + $0x3c0] ss:$8 sps:$4 sm:$0xff]  }
 0x2d1   : > { %v1767_v30 = vld [vmem:[#allocation5 + $0x10] sm:$0xff]  ;;  %v3183_v42 = vpack.c.bf16 %v1770_v22, %v1769_v21  ;;  %2707 = vmatprep.subr.bf16.mxu0 %v3549_v29  ;;  %v3619_v29 = vld [vmem:[%s4802_s5 + $0x1e0] ss:$8 sps:$4 sm:$0xff]  }
 0x2d2   : > { %v1768_v54 = vpack.c.bf16 %v1767_v30, %v1766_v47  ;;  %v1778_v44 = vld [vmem:[#allocation5 + $0x14] sm:$0xff]  ;;  %3178 = vmatprep.mubr.msk.bf16.mxu0 %vm4531_vm2, %v3177_v16  ;;  %v3633_v30 = vld [vmem:[%s4802_s5 + $0x3e4] ss:$8 sps:$4 sm:$0xff]  }
 0x2d3   : > { %3184 = vmatprep.mubr.msk.bf16.mxu1 %vm4547_vm6, %v3183_v42  ;;  %v1779_v33 = vpack.c.bf16 %v1778_v44, %v1748_v53  ;;  %v3610_v53 = vld [vmem:[%s4802_s5 + $0x3a0] ss:$8 sps:$4 sm:$0xff]   ;;  %v3627_v21 = vld [vmem:[%s4802_s5 + $0x1f4] ss:$8 sps:$4 sm:$0xff]   ;;  %v3625_v37 = vld [vmem:[%s4802_s5 + $0x1f0] ss:$8 sps:$4 sm:$0xff]  }
 0x2d4   : > { %2779 = vmatmul.mubr.bf16.vlgmr.msra.gmra.mrb[32].mxu1 %v1768_v54  ;;  %2708 = vmatpush1.bf16.msra.mxu0 %v3547_v34  ;;  %v3630_v47 = vld [vmem:[%s4802_s5 + $0x3d4] ss:$8 sps:$4 sm:$0xff]   ;;  %v3628_v22 = vld [vmem:[%s4802_s5 + $0x3d0] ss:$8 sps:$4 sm:$0xff]   ;;  %v1750_v16 = vld [vmem:[#allocation5 + $0x5] sm:$0xff] }
 0x2d5   : > { %2790 = vmatpush1.bf16.msra.mxu1 %v3550_v17  ;;  %2821 = vmatprep.mubr.bf16.mxu1 %v1779_v33  ;;  %v1751_v34 = vld [vmem:[#allocation5 + $0xd] sm:$0xff]  ;;  %v3631_v42 = vld [vmem:[%s4802_s5 + $0x3e0] ss:$8 sps:$4 sm:$0xff]  }
 0x2d6   : > { %2709 = vmatprep.subr.bf16.mxu0 %v3555_v45  ;;  %2791 = vmatprep.subr.bf16.mxu1 %v3558_v46  ;;  %v3180_v17 = vpack.c.bf16 %v1751_v34, %v1750_v16  ;;  %v3636_v54 = vld [vmem:[%s4802_s5 + $0x3f4] ss:$8 sps:$4 sm:$0xff]   ;;  %v3634_v44 = vld [vmem:[%s4802_s5 + $0x3f0] ss:$8 sps:$4 sm:$0xff]   ;;  %v3639_v45 = vld [vmem:[%s4802_s5 + $0x404] ss:$8 sps:$4 sm:$0xff]  }
 0x2d7   : > { %v1774_v46 = vld [vmem:[#allocation5 + $0x13] sm:$0xff]  ;;  %v3637_v33 = vld [vmem:[%s4802_s5 + $0x400] ss:$8 sps:$4 sm:$0xff]  }
 0x2d8   : > { %2710 = vmatpush1.bf16.msra.mxu0 %v3553_v10  ;;  %v3186_v10 = vpack.c.bf16 %v1774_v46, %v4526_v26  ;;  %v3645_v26 = vld [vmem:[%s4802_s5 + $0x424] ss:$8 sps:$4 sm:$0xff]  }
 0x2d9   : > { %2792 = vmatpush1.bf16.msra.mxu1 %v3556_v55  ;;  %2711 = vmatprep.subr.bf16.mxu0 %v3561_v49  ;;  %v3642_v55 = vld [vmem:[%s4802_s5 + $0x414] ss:$8 sps:$4 sm:$0xff]   ;;  %v3640_v49 = vld [vmem:[%s4802_s5 + $0x410] ss:$8 sps:$4 sm:$0xff]  }
 0x2da   : > { %2793 = vmatprep.subr.bf16.mxu1 %v3564_v41  ;;  %v3671_v41 = vmov 0  }
 0x2dc   : > { %2712 = vmatpush1.bf16.msra.mxu0 %v3559_v0  ;;  %v3643_v0 = vld [vmem:[%s4802_s5 + $0x420] ss:$8 sps:$4 sm:$0xff]  }
 0x2dd   : > { %2794 = vmatpush1.bf16.msra.mxu1 %v3562_v50  ;;  %2713 = vmatprep.subr.bf16.mxu0 %v3567_v58  ;;  %v3646_v50 = vld [vmem:[%s4802_s5 + $0x430] ss:$8 sps:$4 sm:$0xff]   ;;  %v3651_v58 = vld [vmem:[%s4802_s5 + $0x444] ss:$8 sps:$4 sm:$0xff]  }
 0x2de   : > { %2795 = vmatprep.subr.bf16.mxu1 %v3570_v8  ;;  %v3649_v8 = vld [vmem:[%s4802_s5 + $0x440] ss:$8 sps:$4 sm:$0xff]  }
 0x2e0   : > { %2714 = vmatpush1.bf16.msra.mxu0 %v3565_v9  ;;  %v3654_v9 = vld [vmem:[%s4802_s5 + $0x454] ss:$8 sps:$4 sm:$0xff]  }
 0x2e1   : > { %2796 = vmatpush1.bf16.msra.mxu1 %v3568_v38  ;;  %2715 = vmatprep.subr.bf16.mxu0 %v3573_v39  ;;  %v3652_v38 = vld [vmem:[%s4802_s5 + $0x450] ss:$8 sps:$4 sm:$0xff]   ;;  %v3657_v39 = vld [vmem:[%s4802_s5 + $0x464] ss:$8 sps:$4 sm:$0xff]  }
 0x2e2   : > { %2797 = vmatprep.subr.bf16.mxu1 %v3576_v57  ;;  %v3655_v57 = vld [vmem:[%s4802_s5 + $0x460] ss:$8 sps:$4 sm:$0xff]  }
 0x2e4   : > { %2716 = vmatpush1.bf16.msra.mxu0 %v3571_v27  ;;  %v3660_v27 = vld [vmem:[%s4802_s5 + $0x474] ss:$8 sps:$4 sm:$0xff]  }
 0x2e5   : > { %2798 = vmatpush1.bf16.msra.mxu1 %v3574_v43  ;;  %2717 = vmatprep.subr.bf16.mxu0 %v3579_v32  ;;  %v3658_v43 = vld [vmem:[%s4802_s5 + $0x470] ss:$8 sps:$4 sm:$0xff]  }
 0x2e6   : > { %2799 = vmatprep.subr.bf16.mxu1 %v3582_v12  ;;  %v1780_v32 = vld [vmem:[#allocation5 + $0x15] sm:$0xff] }
 0x2e7   : > { %v3189_v12 = vpack.c.bf16 %v1780_v32, %v1751_v34 }
 0x2e8   : > { %2718 = vmatpush1.bf16.msra.mxu0 %v3577_v20 }
 0x2e9   : > { %2800 = vmatpush1.bf16.msra.mxu1 %v3580_v7  ;;  %2719 = vmatprep.subr.bf16.mxu0 %v3585_v24 }
 0x2ea   : > { %2801 = vmatprep.subr.bf16.mxu1 %v3588_v31 }
 0x2ec   : > { %2720 = vmatpush1.bf16.msra.mxu0 %v3583_v25  ;;  %v1932_v25 = vsub.s32 0, %v3849_v62 }
 0x2ed   : > { %2802 = vmatpush1.bf16.msra.mxu1 %v3586_v35  ;;  %2721 = vmatprep.subr.bf16.mxu0 %v3591_v51  ;;  %v1928_v35 = vld [vmem:[%s4803_s6] sm:$0x3]  ;;  %v1936_v51 = vsub.s32 1, %v3849_v62 }
 0x2ee   : > { %2803 = vmatprep.subr.bf16.mxu1 %v3594_v28  ;;  %v1933_v28 = vrot.slane %v1928_v35, %v1932_v25 }
 0x2f0   : > { %2722 = vmatpush1.bf16.msra.mxu0 %v3589_v52  ;;  %v1937_v52 = vrot.slane %v1928_v35, %v1936_v51 }
 0x2f1   : > { %2804 = vmatpush1.bf16.msra.mxu1 %v3592_v11  ;;  %2723 = vmatprep.subr.bf16.mxu0 %v3597_v19 }
 0x2f2   : > { %2805 = vmatprep.subr.bf16.mxu1 %v3600_v60 }
 0x2f4   : > { %2724 = vmatpush1.bf16.msra.mxu0 %v3595_v5 }
 0x2f5   : > { %2806 = vmatpush1.bf16.msra.mxu1 %v3598_v3  ;;  %2725 = vmatprep.subr.bf16.mxu0 %v3603_v61 }
 0x2f6   : > { %2807 = vmatprep.subr.bf16.mxu1 %v3606_v14 }
 0x2f8   : > { %2726 = vmatpush1.bf16.msra.mxu0 %v3601_v6 }
 0x2f9   : > { %2808 = vmatpush1.bf16.msra.mxu1 %v3604_v23  ;;  %2727 = vmatprep.subr.bf16.mxu0 %v3609_v1 }
 0x2fa   : > { %2809 = vmatprep.subr.bf16.mxu1 %v3612_v36 }
 0x2fc   : > { %2728 = vmatpush1.bf16.msra.mxu0 %v3607_v56 }
 0x2fd   : > { %2810 = vmatpush1.bf16.msra.mxu1 %v3610_v53  ;;  %2729 = vmatprep.subr.bf16.mxu0 %v3615_v59 }
 0x2fe   : > { %2811 = vmatprep.subr.bf16.mxu1 %v3618_v13 }
 0x300   : > { %2730 = vmatpush1.bf16.msra.mxu0 %v3613_v40 }
 0x301   : > { %2812 = vmatpush1.bf16.msra.mxu1 %v3616_v4  ;;  %2731 = vmatprep.subr.bf16.mxu0 %v3621_v48 }
 0x302   : > { %2813 = vmatprep.subr.bf16.mxu1 %v3624_v18 }
 0x304   : > { %2732 = vmatpush1.bf16.msra.mxu0 %v3619_v29 }
 0x305   : > { %2814 = vmatpush1.bf16.msra.mxu1 %v3622_v15  ;;  %2733 = vmatprep.subr.bf16.mxu0 %v3627_v21 }
 0x306   : > { %2815 = vmatprep.subr.bf16.mxu1 %v3630_v47 }
 0x308   : > { %2734 = vmatpush1.bf16.msra.mxu0 %v3625_v37 }
 0x309   : > { %2816 = vmatpush1.bf16.msra.mxu1 %v3628_v22 }
 0x30a   : > { %2817 = vmatprep.subr.bf16.mxu1 %v3633_v30 }
 0x30b   : > { %3181 = vmatmul.mubr.msk.bf16.vlgmr.msra.gmra.mrb[40].mxu0 %vm4547_vm6, %v3180_v17 }
 0x30d   : > { %2818 = vmatpush1.bf16.msra.mxu1 %v3631_v42 }
 0x30e   : > { %2819 = vmatprep.subr.bf16.mxu1 %v3636_v54 }
 0x311   : > { %2820 = vmatpush1.bf16.msra.mxu1 %v3634_v44 }
 0x312   : > { %2832 = vmatprep.subr.bf16.mxu1 %v3639_v45 }
 0x314   : > { %3187 = vmatmul.mubr.msk.bf16.vlgmr.msra.gmra.mrb[32].mxu1 %vm4531_vm2, %v3186_v10 }
 0x315   : > { %2833 = vmatpush1.bf16.msra.mxu1 %v3637_v33  ;;  %2864 = vmatprep.mubr.bf16.mxu1 %v3671_v41 }
 0x316   : > { %2834 = vmatprep.subr.bf16.mxu1 %v3642_v55 }
 0x319   : > { %2835 = vmatpush1.bf16.msra.mxu1 %v3640_v49 }
 0x31a   : > { %2836 = vmatprep.subr.bf16.mxu1 %v3645_v26 }
 0x31d   : > { %2837 = vmatpush1.bf16.msra.mxu1 %v3643_v0 }
 0x31e   : > { %2838 = vmatprep.subr.bf16.mxu1 %v3648_v2 }
 0x321   : > { %2839 = vmatpush1.bf16.msra.mxu1 %v3646_v50 }
 0x322   : > { %2840 = vmatprep.subr.bf16.mxu1 %v3651_v58 }
 0x325   : > { %2841 = vmatpush1.bf16.msra.mxu1 %v3649_v8 }
 0x326   : > { %2842 = vmatprep.subr.bf16.mxu1 %v3654_v9 }
 0x329   : > { %2843 = vmatpush1.bf16.msra.mxu1 %v3652_v38 }
 0x32a   : > { %2844 = vmatprep.subr.bf16.mxu1 %v3657_v39 }
 0x32d   : > { %2845 = vmatpush1.bf16.msra.mxu1 %v3655_v57 }
 0x32e   : > { %2846 = vmatprep.subr.bf16.mxu1 %v3660_v27 }
 0x331   : > { %2847 = vmatpush1.bf16.msra.mxu1 %v3658_v43 }
 0x334   : > { %3190 = vmatmul.mubr.msk.bf16.vlgmr.msra.gmra.mrb[32].mxu1 %vm4547_vm6, %v3189_v12 }
 0x3de   : > { %v2737_v20 = vpop.f32.mrb[40].mxu0 }
 0x3df   : > { %v2739_v7 = vpop.f32.mrb[41].mxu0  ;;  %v3358_v63 = vadd.f32 %v2737_v20, %v1933_v28 }
 0x3e0   : > { %v2741_v24 = vpop.f32.mrb[42].mxu0  ;;  %v3360_v11 = vadd.f32 %v2739_v7, %v1937_v52 }
 0x3e1   : > { %v2743_v31 = vpop.f32.mrb[43].mxu0  ;;  %v3362_v60 = vadd.f32 %v2741_v24, %v1933_v28 }
 0x3e2   : > { %v3364_v61 = vadd.f32 %v2743_v31, %v1937_v52 }
 0x407   : > { %v2866_v19 = vpop.f32.mrb[32].mxu1 }
 0x408   : > { %v3359_v5 = vadd.f32 %v3358_v63, %v2866_v19  ;;  %v2868_v3 = vpop.f32.mrb[33].mxu1 }
 0x409   : > { %v3361_v14 = vadd.f32 %v3360_v11, %v2868_v3  ;;  %v2870_v6 = vpop.f32.mrb[34].mxu1 }
 0x40a   : > { %v2875_v23 = vmax.f32 %v3359_v5, 0.0  ;;  %v3363_v1 = vadd.f32 %v3362_v60, %v2870_v6  ;;  %v2872_v62 = vpop.f32.mrb[35].mxu1 }
 0x40b   : > { %v2876_v36 = vmax.f32 %v3361_v14, 0.0  ;;  %v3365_v56 = vadd.f32 %v3364_v61, %v2872_v62 }
 0x40c   : > { %2879 = vst [vmem:[%s282_s8] sm:$0xff] %v2875_v23  ;;  %v2877_v53 = vmax.f32 %v3363_v1, 0.0 }
 0x40d   : > { %2880 = vst [vmem:[%s282_s8 + $0x8] sm:$0xff] %v2876_v36  ;;  %v2878_v59 = vmax.f32 %v3365_v56, 0.0 }
 0x40e   : > { %2881 = vst [vmem:[%s282_s8 + $0x10] sm:$0xff] %v2877_v53 }
 0x40f   : > { %2882 = vst [vmem:[%s282_s8 + $0x18] sm:$0xff] %v2878_v59 }
 0x410 PF: > { %s17_s24 = sadd.s32 1, %s3667_s24  }
 0x411   : > { %p14_p5 = scmp.ge.s32.totalorder %s17_s24, 4  }
 0x413   :  { %16 = sbr.rel (!%p14_p5) target bundleno = 1 (0x1), region = 116 }

</bundles_post_ra>
